<compile_context>
chip_gen: v6e
topology: v6e:2x2x1
jax: 0.10.0
libtpu: 0.0.40
codegen_flags: <defaults>
</compile_context>

<pallas_src>
import numpy as np
import jax
import jax.numpy as jnp
from jax.experimental import pallas as pl
from jax.experimental.pallas import tpu as pltpu


# ----------------------------------------------------------------------------
# In-kernel helpers (everything is plain 2-D jnp.dot on the MXU + VPU clip/add)
# ----------------------------------------------------------------------------
def _relu6(x):
    return jnp.clip(x, 0.0, 6.0)


def _strided_conv(y, sel_ref, mix_ref, bias_ref):
    """3x3 / stride-2 / pad-1 conv (+folded BN +ReLU6) as 6 small MXU matmuls.

    y        : [hi, wi*Cin]        activation value, channel-fastest columns
    sel_ref  : [3, ho, hi]         0/1 stride-2 row selection (rows 2i+ki-1)
    mix_ref  : [3, wi*Cin, wo*Co]  tap / column-mixing weights (BN folded)
    bias_ref : [1, wo*Co]          folded BN bias, tiled over output columns
    returns  : [ho, wo*Co]
    """
    acc = None
    for ki in range(3):
        rows = jnp.dot(sel_ref[ki], y, preferred_element_type=jnp.float32)
        term = jnp.dot(rows, mix_ref[ki], preferred_element_type=jnp.float32)
        acc = term if acc is None else acc + term
    return _relu6(acc + bias_ref[...])


def _pointwise(y, p_ref, bias_ref):
    """1x1 conv (+folded BN +ReLU6) as one block-diagonal matmul."""
    return _relu6(jnp.dot(y, p_ref[...], preferred_element_type=jnp.float32)
                  + bias_ref[...])


# ----------------------------------------------------------------------------
# The fused per-image kernel: layer1 -> layer2 -> layer3 -> layer4 -> fc1
# ----------------------------------------------------------------------------
def _net_kernel(x_ref,
                s1_ref, m1_ref, b1_ref,
                r2_ref, d2_ref, bd2_ref, p2_ref, bp2_ref,
                r3_ref, d3_ref, bd3_ref, p3_ref, bp3_ref,
                r4_ref, d4_ref, bd4_ref, p4_ref, bp4_ref,
                fw_ref, fb_ref,
                out_ref):
    x = x_ref[0]                                          # [32, 32], one image

    y = _strided_conv(x, s1_ref, m1_ref, b1_ref)          # layer1      -> [16, 16*4]
    y = _strided_conv(y, r2_ref, d2_ref, bd2_ref)         # layer2 dw   -> [ 8,  8*4]
    y = _pointwise(y, p2_ref, bp2_ref)                    # layer2 pw   -> [ 8,  8*4]
    y = _strided_conv(y, r3_ref, d3_ref, bd3_ref)         # layer3 dw   -> [ 4,  4*4]
    y = _pointwise(y, p3_ref, bp3_ref)                    # layer3 pw   -> [ 4,  4*8]
    y = _strided_conv(y, r4_ref, d4_ref, bd4_ref)         # layer4 dw   -> [ 2,  2*8]
    y = _pointwise(y, p4_ref, bp4_ref)                    # layer4 pw   -> [ 2, 2*16]

    # Dropout(0.5): identity in eval mode (see TODO at top of file).
    # fc1: Linear(64, 34).  fw is pre-permuted to this kernel's (h, w, c)
    # flatten layout, so the two row-matmuls realize torch's view(-1, 64) @ W^T.
    out = (jnp.dot(y[0:1, :], fw_ref[0], preferred_element_type=jnp.float32)
           + jnp.dot(y[1:2, :], fw_ref[1], preferred_element_type=jnp.float32)
           + fb_ref[...])                                  # [1, 34]
    out_ref[0] = out


# ----------------------------------------------------------------------------
# Host-side wrapper: free reshape of the input, one pallas_call over the batch
# ----------------------------------------------------------------------------
def _const_spec(shape):
    n = len(shape)
    return pl.BlockSpec(shape, lambda b, _n=n: (0,) * _n)


@jax.jit
def net_forward(x_nchw, kp):
    B, C, H, W = x_nchw.shape
    assert (C, H, W) == (1, 32, 32), "Net implies a [B, 1, 32, 32] input"
    x = x_nchw.reshape(B, 32, 32).astype(jnp.float32)      # C=1: pure reshape

    weights = (kp["s1"], kp["m1"], kp["b1"],
               kp["r2"], kp["d2"], kp["bd2"], kp["p2"], kp["bp2"],
               kp["r3"], kp["d3"], kp["bd3"], kp["p3"], kp["bp3"],
               kp["r4"], kp["d4"], kp["bd4"], kp["p4"], kp["bp4"],
               kp["fw"], kp["fb"])

    out = pl.pallas_call(
        _net_kernel,
        out_shape=jax.ShapeDtypeStruct((B, 1, 34), jnp.float32),
        grid=(B,),
        in_specs=[pl.BlockSpec((1, 32, 32), lambda b: (b, 0, 0))]
                 + [_const_spec(w.shape) for w in weights],
        out_specs=pl.BlockSpec((1, 1, 34), lambda b: (b, 0, 0)),
        compiler_params=pltpu.CompilerParams(
            dimension_semantics=("parallel",)),
    )(x, *weights)
    return out.reshape(B, 34)


# ----------------------------------------------------------------------------
# Host-side construction of the matmul operands (BN folded, pad folded in)
# ----------------------------------------------------------------------------
def _fold_bn(bn, eps=1e-5):
    scale = np.asarray(bn["gamma"], np.float32) / np.sqrt(
        np.asarray(bn["var"], np.float32) + eps)
    bias = np.asarray(bn["beta"], np.float32) - np.asarray(bn["mean"], np.float32) * scale
    return scale, bias


def _row_select(ho, hi):
    """R[ki][i, 2i+ki-1] = 1 (rows that fall in the zero pad are simply absent)."""
    r = np.zeros((3, ho, hi), np.float32)
    for ki in range(3):
        for i in range(ho):
            src = 2 * i + ki - 1
            if 0 <= src < hi:
                r[ki, i, src] = 1.0
    return r


def _col_mix(w_ocikk, wi, wo):
    """w: [Cout, Cin, 3, 3] (BN scale folded) -> D: [3, wi*Cin, wo*Cout]."""
    cout, cin = w_ocikk.shape[:2]
    m = np.zeros((3, wi * cin, wo * cout), np.float32)
    for ki in range(3):
        for j in range(wo):
            for kj in range(3):
                q = 2 * j + kj - 1            # input column; OOB -> zero pad
                if 0 <= q < wi:
                    m[ki, q * cin:(q + 1) * cin, j * cout:(j + 1) * cout] = \
                        w_ocikk[:, :, ki, kj].T
    return m


def _expand_depthwise(wd):
    """[C, 1, 3, 3] depthwise weight -> channel-diagonal [C, C, 3, 3]."""
    c = wd.shape[0]
    w = np.zeros((c, c, 3, 3), np.float32)
    for ch in range(c):
        w[ch, ch] = wd[ch, 0]
    return w


def _pw_mix(wp_oc_ic, wo):
    """1x1 conv weight [Cout, Cin] (BN folded) -> block-diag [wo*Cin, wo*Cout]."""
    cout, cin = wp_oc_ic.shape
    p = np.zeros((wo * cin, wo * cout), np.float32)
    for j in range(wo):
        p[j * cin:(j + 1) * cin, j * cout:(j + 1) * cout] = wp_oc_ic.T
    return p


def _bias_row(b, wo):
    return np.tile(np.asarray(b, np.float32), wo).reshape(1, -1)


def _fc_mix(fcw):
    """torch fc weight [34, 64] (flat idx c*4 + i*2 + j) -> F[i][j*16+c, o]."""
    fcw = np.asarray(fcw, np.float32)
    f = np.zeros((2, 32, 34), np.float32)
    for i in range(2):
        for j in range(2):
            for c in range(16):
                f[i, j * 16 + c, :] = fcw[:, c * 4 + i * 2 + j]
    return f


def build_kernel_params(p):
    kp = {}

    # layer1: Conv2d(1, 4, 3, s=2, p=1, bias=False) + BN(4) + ReLU6
    s1, b1 = _fold_bn(p["bn1"])
    w1 = np.asarray(p["w1"], np.float32) * s1[:, None, None, None]
    kp["s1"] = _row_select(16, 32)
    kp["m1"] = _col_mix(w1, 32, 16)
    kp["b1"] = _bias_row(b1, 16)

    def dw_pw(wd, bnd, wp, bnp, hi, wi):
        ho, wo = hi // 2, wi // 2
        sd, bd = _fold_bn(bnd)
        wdf = np.asarray(wd, np.float32) * sd[:, None, None, None]
        sp, bp = _fold_bn(bnp)
        wpf = np.asarray(wp, np.float32)[:, :, 0, 0] * sp[:, None]
        return (_row_select(ho, hi),
                _col_mix(_expand_depthwise(wdf), wi, wo),
                _bias_row(bd, wo),
                _pw_mix(wpf, wo),
                _bias_row(bp, wo))

    kp["r2"], kp["d2"], kp["bd2"], kp["p2"], kp["bp2"] = dw_pw(
        p["w2d"], p["bn2d"], p["w2p"], p["bn2p"], 16, 16)
    kp["r3"], kp["d3"], kp["bd3"], kp["p3"], kp["bp3"] = dw_pw(
        p["w3d"], p["bn3d"], p["w3p"], p["bn3p"], 8, 8)
    kp["r4"], kp["d4"], kp["bd4"], kp["p4"], kp["bp4"] = dw_pw(
        p["w4d"], p["bn4d"], p["w4p"], p["bn4p"], 4, 4)

    kp["fw"] = _fc_mix(p["fcw"])
    kp["fb"] = np.asarray(p["fcb"], np.float32).reshape(1, 34)
    return {k: jnp.asarray(v) for k, v in kp.items()}


# ----------------------------------------------------------------------------
# Deterministic synthetic parameters in PyTorch layout (eval-mode BN stats)
# ----------------------------------------------------------------------------
def init_torch_params(key):
    counter = [0]

    def nk():
        counter[0] += 1
        return jax.random.fold_in(key, counter[0])

    def conv_w(shape):
        return 0.1 * jax.random.normal(nk(), shape, jnp.float32)

    def bn(ch):
        return dict(
            gamma=1.0 + 0.1 * jax.random.normal(nk(), (ch,), jnp.float32),
            beta=0.05 * jax.random.normal(nk(), (ch,), jnp.float32),
            mean=0.02 * jax.random.normal(nk(), (ch,), jnp.float32),
            var=jnp.abs(1.0 + 0.1 * jax.random.normal(nk(), (ch,), jnp.float32)),
        )

    return dict(
        w1=conv_w((4, 1, 3, 3)), bn1=bn(4),
        w2d=conv_w((4, 1, 3, 3)), bn2d=bn(4),
        w2p=conv_w((4, 4, 1, 1)), bn2p=bn(4),
        w3d=conv_w((4, 1, 3, 3)), bn3d=bn(4),
        w3p=conv_w((8, 4, 1, 1)), bn3p=bn(8),
        w4d=conv_w((8, 1, 3, 3)), bn4d=bn(8),
        w4p=conv_w((16, 8, 1, 1)), bn4p=bn(16),
        fcw=0.1 * jax.random.normal(nk(), (34, 64), jnp.float32),
        fcb=0.05 * jax.random.normal(nk(), (34,), jnp.float32),
    )


# ----------------------------------------------------------------------------
# Pure-JAX reference (eval-mode PyTorch semantics) for a correctness check
# ----------------------------------------------------------------------------
def _ref_forward(x, p, eps=1e-5):
    def bn_relu6(y, bn):
        scale = bn["gamma"] / jnp.sqrt(bn["var"] + eps)
        shift = bn["beta"] - bn["mean"] * scale
        return jnp.clip(y * scale[None, :, None, None] + shift[None, :, None, None],
                        0.0, 6.0)

    def conv(y, w, stride, pad, groups=1):
        return jax.lax.conv_general_dilated(
            y, w, (stride, stride), ((pad, pad), (pad, pad)),
            dimension_numbers=("NCHW", "OIHW", "NCHW"),
            feature_group_count=groups,
            precision=jax.lax.Precision.HIGHEST)

    y = bn_relu6(conv(x, p["w1"], 2, 1), p["bn1"])
    y = bn_relu6(conv(y, p["w2d"], 2, 1, groups=4), p["bn2d"])
    y = bn_relu6(conv(y, p["w2p"], 1, 0), p["bn2p"])
    y = bn_relu6(conv(y, p["w3d"], 2, 1, groups=4), p["bn3d"])
    y = bn_relu6(conv(y, p["w3p"], 1, 0), p["bn3p"])
    y = bn_relu6(conv(y, p["w4d"], 2, 1, groups=8), p["bn4d"])
    y = bn_relu6(conv(y, p["w4p"], 1, 0), p["bn4p"])
    y = y.reshape(y.shape[0], -1)                  # torch .view(-1, 64): (c,h,w)
    return y @ p["fcw"].T + p["fcb"]               # Dropout = identity in eval


if __name__ == "__main__":
    key = jax.random.PRNGKey(0)
    k_x, k_p = jax.random.split(key)

    # Input implied by the forward pass: 1 channel, 32x32 spatial
    # (4 stride-2 layers -> 2x2 spatial, 16 channels -> view(-1, 64)).
    x = jax.random.normal(k_x, (2, 1, 32, 32), jnp.float32)
    torch_params = init_torch_params(k_p)
    kernel_params = build_kernel_params(torch_params)

    out = jax.block_until_ready(net_forward(x, kernel_params))
    assert out.shape == (2, 34), out.shape
    assert out.dtype == jnp.float32
    assert bool(jnp.all(jnp.isfinite(out)))

    ref = _ref_forward(x, torch_params)
    assert bool(jnp.allclose(out, ref, rtol=5e-2, atol=5e-2)), (
        "kernel / reference mismatch")

    print("KERNEL_OK")
</pallas_src>

<mosaic_0001>
module attributes {stable_mosaic.version = 11 : i64} {
  func.func @_net_kernel(%arg0: i32, %arg1: memref<1x32x32xf32, #tpu.memory_space<vmem>>, %arg2: memref<3x16x32xf32, #tpu.memory_space<vmem>>, %arg3: memref<3x32x64xf32, #tpu.memory_space<vmem>>, %arg4: memref<1x64xf32, #tpu.memory_space<vmem>>, %arg5: memref<3x8x16xf32, #tpu.memory_space<vmem>>, %arg6: memref<3x64x32xf32, #tpu.memory_space<vmem>>, %arg7: memref<1x32xf32, #tpu.memory_space<vmem>>, %arg8: memref<32x32xf32, #tpu.memory_space<vmem>>, %arg9: memref<1x32xf32, #tpu.memory_space<vmem>>, %arg10: memref<3x4x8xf32, #tpu.memory_space<vmem>>, %arg11: memref<3x32x16xf32, #tpu.memory_space<vmem>>, %arg12: memref<1x16xf32, #tpu.memory_space<vmem>>, %arg13: memref<16x32xf32, #tpu.memory_space<vmem>>, %arg14: memref<1x32xf32, #tpu.memory_space<vmem>>, %arg15: memref<3x2x4xf32, #tpu.memory_space<vmem>>, %arg16: memref<3x32x16xf32, #tpu.memory_space<vmem>>, %arg17: memref<1x16xf32, #tpu.memory_space<vmem>>, %arg18: memref<16x32xf32, #tpu.memory_space<vmem>>, %arg19: memref<1x32xf32, #tpu.memory_space<vmem>>, %arg20: memref<2x32x34xf32, #tpu.memory_space<vmem>>, %arg21: memref<1x34xf32, #tpu.memory_space<vmem>>, %arg22: memref<1x1x34xf32, #tpu.memory_space<vmem>>) attributes {dimension_semantics = [#tpu.dimension_semantics<parallel>], iteration_bounds = array<i64: 2>, scalar_prefetch = 0 : i64, scratch_operands = 0 : i64, tpu.core_type = #tpu.core_type<tc>, window_params = [{transform_indices = @transform_0, window_bounds = array<i64: 1, 32, 32>}, {pipeline_mode = #tpu.pipeline_mode<synchronous>, transform_indices = @transform_1, window_bounds = array<i64: 3, 16, 32>}, {pipeline_mode = #tpu.pipeline_mode<synchronous>, transform_indices = @transform_2, window_bounds = array<i64: 3, 32, 64>}, {pipeline_mode = #tpu.pipeline_mode<synchronous>, transform_indices = @transform_3, window_bounds = array<i64: 1, 64>}, {pipeline_mode = #tpu.pipeline_mode<synchronous>, transform_indices = @transform_4, window_bounds = array<i64: 3, 8, 16>}, {pipeline_mode = #tpu.pipeline_mode<synchronous>, transform_indices = @transform_5, window_bounds = array<i64: 3, 64, 32>}, {pipeline_mode = #tpu.pipeline_mode<synchronous>, transform_indices = @transform_6, window_bounds = array<i64: 1, 32>}, {pipeline_mode = #tpu.pipeline_mode<synchronous>, transform_indices = @transform_7, window_bounds = array<i64: 32, 32>}, {pipeline_mode = #tpu.pipeline_mode<synchronous>, transform_indices = @transform_8, window_bounds = array<i64: 1, 32>}, {pipeline_mode = #tpu.pipeline_mode<synchronous>, transform_indices = @transform_9, window_bounds = array<i64: 3, 4, 8>}, {pipeline_mode = #tpu.pipeline_mode<synchronous>, transform_indices = @transform_10, window_bounds = array<i64: 3, 32, 16>}, {pipeline_mode = #tpu.pipeline_mode<synchronous>, transform_indices = @transform_11, window_bounds = array<i64: 1, 16>}, {pipeline_mode = #tpu.pipeline_mode<synchronous>, transform_indices = @transform_12, window_bounds = array<i64: 16, 32>}, {pipeline_mode = #tpu.pipeline_mode<synchronous>, transform_indices = @transform_13, window_bounds = array<i64: 1, 32>}, {pipeline_mode = #tpu.pipeline_mode<synchronous>, transform_indices = @transform_14, window_bounds = array<i64: 3, 2, 4>}, {pipeline_mode = #tpu.pipeline_mode<synchronous>, transform_indices = @transform_15, window_bounds = array<i64: 3, 32, 16>}, {pipeline_mode = #tpu.pipeline_mode<synchronous>, transform_indices = @transform_16, window_bounds = array<i64: 1, 16>}, {pipeline_mode = #tpu.pipeline_mode<synchronous>, transform_indices = @transform_17, window_bounds = array<i64: 16, 32>}, {pipeline_mode = #tpu.pipeline_mode<synchronous>, transform_indices = @transform_18, window_bounds = array<i64: 1, 32>}, {pipeline_mode = #tpu.pipeline_mode<synchronous>, transform_indices = @transform_19, window_bounds = array<i64: 2, 32, 34>}, {pipeline_mode = #tpu.pipeline_mode<synchronous>, transform_indices = @transform_20, window_bounds = array<i64: 1, 34>}, {transform_indices = @transform_21, window_bounds = array<i64: 1, 1, 34>}]} {
    %c0 = arith.constant 0 : index
    %c0_0 = arith.constant 0 : index
    %c0_1 = arith.constant 0 : index
    %0 = vector.load %arg1[%c0, %c0_0, %c0_1] : memref<1x32x32xf32, #tpu.memory_space<vmem>>, vector<1x32x32xf32>
    %1 = vector.shape_cast %0 : vector<1x32x32xf32> to vector<32x32xf32>
    %c0_2 = arith.constant 0 : index
    %c0_3 = arith.constant 0 : index
    %c0_4 = arith.constant 0 : index
    %2 = vector.load %arg2[%c0_2, %c0_3, %c0_4] : memref<3x16x32xf32, #tpu.memory_space<vmem>>, vector<1x16x32xf32>
    %3 = vector.shape_cast %2 : vector<1x16x32xf32> to vector<16x32xf32>
    %cst = arith.constant dense<0.000000e+00> : vector<16x32xf32>
    %4 = tpu.matmul %3, %1, %cst {dimension_numbers = #tpu.dot_dimension_numbers<[1], [0], [0], [1], [0, 0, 1, 1], [], []>} : vector<16x32xf32>, vector<32x32xf32>, vector<16x32xf32> -> vector<16x32xf32>
    %c0_5 = arith.constant 0 : index
    %c0_6 = arith.constant 0 : index
    %c0_7 = arith.constant 0 : index
    %5 = vector.load %arg3[%c0_5, %c0_6, %c0_7] : memref<3x32x64xf32, #tpu.memory_space<vmem>>, vector<1x32x64xf32>
    %6 = vector.shape_cast %5 : vector<1x32x64xf32> to vector<32x64xf32>
    %cst_8 = arith.constant dense<0.000000e+00> : vector<16x64xf32>
    %7 = tpu.matmul %4, %6, %cst_8 {dimension_numbers = #tpu.dot_dimension_numbers<[1], [0], [0], [1], [0, 0, 1, 1], [], []>} : vector<16x32xf32>, vector<32x64xf32>, vector<16x64xf32> -> vector<16x64xf32>
    %c1 = arith.constant 1 : index
    %c0_9 = arith.constant 0 : index
    %c0_10 = arith.constant 0 : index
    %8 = vector.load %arg2[%c1, %c0_9, %c0_10] : memref<3x16x32xf32, #tpu.memory_space<vmem>>, vector<1x16x32xf32>
    %9 = vector.shape_cast %8 : vector<1x16x32xf32> to vector<16x32xf32>
    %cst_11 = arith.constant dense<0.000000e+00> : vector<16x32xf32>
    %10 = tpu.matmul %9, %1, %cst_11 {dimension_numbers = #tpu.dot_dimension_numbers<[1], [0], [0], [1], [0, 0, 1, 1], [], []>} : vector<16x32xf32>, vector<32x32xf32>, vector<16x32xf32> -> vector<16x32xf32>
    %c1_12 = arith.constant 1 : index
    %c0_13 = arith.constant 0 : index
    %c0_14 = arith.constant 0 : index
    %11 = vector.load %arg3[%c1_12, %c0_13, %c0_14] : memref<3x32x64xf32, #tpu.memory_space<vmem>>, vector<1x32x64xf32>
    %12 = vector.shape_cast %11 : vector<1x32x64xf32> to vector<32x64xf32>
    %cst_15 = arith.constant dense<0.000000e+00> : vector<16x64xf32>
    %13 = tpu.matmul %10, %12, %cst_15 {dimension_numbers = #tpu.dot_dimension_numbers<[1], [0], [0], [1], [0, 0, 1, 1], [], []>} : vector<16x32xf32>, vector<32x64xf32>, vector<16x64xf32> -> vector<16x64xf32>
    %14 = arith.addf %7, %13 : vector<16x64xf32>
    %c2 = arith.constant 2 : index
    %c0_16 = arith.constant 0 : index
    %c0_17 = arith.constant 0 : index
    %15 = vector.load %arg2[%c2, %c0_16, %c0_17] : memref<3x16x32xf32, #tpu.memory_space<vmem>>, vector<1x16x32xf32>
    %16 = vector.shape_cast %15 : vector<1x16x32xf32> to vector<16x32xf32>
    %cst_18 = arith.constant dense<0.000000e+00> : vector<16x32xf32>
    %17 = tpu.matmul %16, %1, %cst_18 {dimension_numbers = #tpu.dot_dimension_numbers<[1], [0], [0], [1], [0, 0, 1, 1], [], []>} : vector<16x32xf32>, vector<32x32xf32>, vector<16x32xf32> -> vector<16x32xf32>
    %c2_19 = arith.constant 2 : index
    %c0_20 = arith.constant 0 : index
    %c0_21 = arith.constant 0 : index
    %18 = vector.load %arg3[%c2_19, %c0_20, %c0_21] : memref<3x32x64xf32, #tpu.memory_space<vmem>>, vector<1x32x64xf32>
    %19 = vector.shape_cast %18 : vector<1x32x64xf32> to vector<32x64xf32>
    %cst_22 = arith.constant dense<0.000000e+00> : vector<16x64xf32>
    %20 = tpu.matmul %17, %19, %cst_22 {dimension_numbers = #tpu.dot_dimension_numbers<[1], [0], [0], [1], [0, 0, 1, 1], [], []>} : vector<16x32xf32>, vector<32x64xf32>, vector<16x64xf32> -> vector<16x64xf32>
    %21 = arith.addf %14, %20 : vector<16x64xf32>
    %c0_23 = arith.constant 0 : index
    %c0_24 = arith.constant 0 : index
    %22 = vector.load %arg4[%c0_23, %c0_24] : memref<1x64xf32, #tpu.memory_space<vmem>>, vector<1x64xf32>
    %23 = vector.broadcast %22 : vector<1x64xf32> to vector<16x64xf32>
    %24 = arith.addf %21, %23 : vector<16x64xf32>
    %cst_25 = arith.constant 0.000000e+00 : f32
    %cst_26 = arith.constant 6.000000e+00 : f32
    %25 = vector.broadcast %cst_25 : f32 to vector<16x64xf32>
    %26 = arith.maximumf %25, %24 : vector<16x64xf32>
    %27 = vector.broadcast %cst_26 : f32 to vector<16x64xf32>
    %28 = arith.minimumf %27, %26 : vector<16x64xf32>
    %c0_27 = arith.constant 0 : index
    %c0_28 = arith.constant 0 : index
    %c0_29 = arith.constant 0 : index
    %29 = vector.load %arg5[%c0_27, %c0_28, %c0_29] : memref<3x8x16xf32, #tpu.memory_space<vmem>>, vector<1x8x16xf32>
    %30 = vector.shape_cast %29 : vector<1x8x16xf32> to vector<8x16xf32>
    %cst_30 = arith.constant dense<0.000000e+00> : vector<8x64xf32>
    %31 = tpu.matmul %30, %28, %cst_30 {dimension_numbers = #tpu.dot_dimension_numbers<[1], [0], [0], [1], [0, 0, 1, 1], [], []>} : vector<8x16xf32>, vector<16x64xf32>, vector<8x64xf32> -> vector<8x64xf32>
    %c0_31 = arith.constant 0 : index
    %c0_32 = arith.constant 0 : index
    %c0_33 = arith.constant 0 : index
    %32 = vector.load %arg6[%c0_31, %c0_32, %c0_33] : memref<3x64x32xf32, #tpu.memory_space<vmem>>, vector<1x64x32xf32>
    %33 = vector.shape_cast %32 : vector<1x64x32xf32> to vector<64x32xf32>
    %cst_34 = arith.constant dense<0.000000e+00> : vector<8x32xf32>
    %34 = tpu.matmul %31, %33, %cst_34 {dimension_numbers = #tpu.dot_dimension_numbers<[1], [0], [0], [1], [0, 0, 1, 1], [], []>} : vector<8x64xf32>, vector<64x32xf32>, vector<8x32xf32> -> vector<8x32xf32>
    %c1_35 = arith.constant 1 : index
    %c0_36 = arith.constant 0 : index
    %c0_37 = arith.constant 0 : index
    %35 = vector.load %arg5[%c1_35, %c0_36, %c0_37] : memref<3x8x16xf32, #tpu.memory_space<vmem>>, vector<1x8x16xf32>
    %36 = vector.shape_cast %35 : vector<1x8x16xf32> to vector<8x16xf32>
    %cst_38 = arith.constant dense<0.000000e+00> : vector<8x64xf32>
    %37 = tpu.matmul %36, %28, %cst_38 {dimension_numbers = #tpu.dot_dimension_numbers<[1], [0], [0], [1], [0, 0, 1, 1], [], []>} : vector<8x16xf32>, vector<16x64xf32>, vector<8x64xf32> -> vector<8x64xf32>
    %c1_39 = arith.constant 1 : index
    %c0_40 = arith.constant 0 : index
    %c0_41 = arith.constant 0 : index
    %38 = vector.load %arg6[%c1_39, %c0_40, %c0_41] : memref<3x64x32xf32, #tpu.memory_space<vmem>>, vector<1x64x32xf32>
    %39 = vector.shape_cast %38 : vector<1x64x32xf32> to vector<64x32xf32>
    %cst_42 = arith.constant dense<0.000000e+00> : vector<8x32xf32>
    %40 = tpu.matmul %37, %39, %cst_42 {dimension_numbers = #tpu.dot_dimension_numbers<[1], [0], [0], [1], [0, 0, 1, 1], [], []>} : vector<8x64xf32>, vector<64x32xf32>, vector<8x32xf32> -> vector<8x32xf32>
    %41 = arith.addf %34, %40 : vector<8x32xf32>
    %c2_43 = arith.constant 2 : index
    %c0_44 = arith.constant 0 : index
    %c0_45 = arith.constant 0 : index
    %42 = vector.load %arg5[%c2_43, %c0_44, %c0_45] : memref<3x8x16xf32, #tpu.memory_space<vmem>>, vector<1x8x16xf32>
    %43 = vector.shape_cast %42 : vector<1x8x16xf32> to vector<8x16xf32>
    %cst_46 = arith.constant dense<0.000000e+00> : vector<8x64xf32>
    %44 = tpu.matmul %43, %28, %cst_46 {dimension_numbers = #tpu.dot_dimension_numbers<[1], [0], [0], [1], [0, 0, 1, 1], [], []>} : vector<8x16xf32>, vector<16x64xf32>, vector<8x64xf32> -> vector<8x64xf32>
    %c2_47 = arith.constant 2 : index
    %c0_48 = arith.constant 0 : index
    %c0_49 = arith.constant 0 : index
    %45 = vector.load %arg6[%c2_47, %c0_48, %c0_49] : memref<3x64x32xf32, #tpu.memory_space<vmem>>, vector<1x64x32xf32>
    %46 = vector.shape_cast %45 : vector<1x64x32xf32> to vector<64x32xf32>
    %cst_50 = arith.constant dense<0.000000e+00> : vector<8x32xf32>
    %47 = tpu.matmul %44, %46, %cst_50 {dimension_numbers = #tpu.dot_dimension_numbers<[1], [0], [0], [1], [0, 0, 1, 1], [], []>} : vector<8x64xf32>, vector<64x32xf32>, vector<8x32xf32> -> vector<8x32xf32>
    %48 = arith.addf %41, %47 : vector<8x32xf32>
    %c0_51 = arith.constant 0 : index
    %c0_52 = arith.constant 0 : index
    %49 = vector.load %arg7[%c0_51, %c0_52] : memref<1x32xf32, #tpu.memory_space<vmem>>, vector<1x32xf32>
    %50 = vector.broadcast %49 : vector<1x32xf32> to vector<8x32xf32>
    %51 = arith.addf %48, %50 : vector<8x32xf32>
    %cst_53 = arith.constant 0.000000e+00 : f32
    %cst_54 = arith.constant 6.000000e+00 : f32
    %52 = vector.broadcast %cst_53 : f32 to vector<8x32xf32>
    %53 = arith.maximumf %52, %51 : vector<8x32xf32>
    %54 = vector.broadcast %cst_54 : f32 to vector<8x32xf32>
    %55 = arith.minimumf %54, %53 : vector<8x32xf32>
    %c0_55 = arith.constant 0 : index
    %c0_56 = arith.constant 0 : index
    %56 = vector.load %arg8[%c0_55, %c0_56] : memref<32x32xf32, #tpu.memory_space<vmem>>, vector<32x32xf32>
    %cst_57 = arith.constant dense<0.000000e+00> : vector<8x32xf32>
    %57 = tpu.matmul %55, %56, %cst_57 {dimension_numbers = #tpu.dot_dimension_numbers<[1], [0], [0], [1], [0, 0, 1, 1], [], []>} : vector<8x32xf32>, vector<32x32xf32>, vector<8x32xf32> -> vector<8x32xf32>
    %c0_58 = arith.constant 0 : index
    %c0_59 = arith.constant 0 : index
    %58 = vector.load %arg9[%c0_58, %c0_59] : memref<1x32xf32, #tpu.memory_space<vmem>>, vector<1x32xf32>
    %59 = vector.broadcast %58 : vector<1x32xf32> to vector<8x32xf32>
    %60 = arith.addf %57, %59 : vector<8x32xf32>
    %cst_60 = arith.constant 0.000000e+00 : f32
    %cst_61 = arith.constant 6.000000e+00 : f32
    %61 = vector.broadcast %cst_60 : f32 to vector<8x32xf32>
    %62 = arith.maximumf %61, %60 : vector<8x32xf32>
    %63 = vector.broadcast %cst_61 : f32 to vector<8x32xf32>
    %64 = arith.minimumf %63, %62 : vector<8x32xf32>
    %c0_62 = arith.constant 0 : index
    %c0_63 = arith.constant 0 : index
    %c0_64 = arith.constant 0 : index
    %65 = vector.load %arg10[%c0_62, %c0_63, %c0_64] : memref<3x4x8xf32, #tpu.memory_space<vmem>>, vector<1x4x8xf32>
    %66 = vector.shape_cast %65 : vector<1x4x8xf32> to vector<4x8xf32>
    %cst_65 = arith.constant dense<0.000000e+00> : vector<4x32xf32>
    %67 = tpu.matmul %66, %64, %cst_65 {dimension_numbers = #tpu.dot_dimension_numbers<[1], [0], [0], [1], [0, 0, 1, 1], [], []>} : vector<4x8xf32>, vector<8x32xf32>, vector<4x32xf32> -> vector<4x32xf32>
    %c0_66 = arith.constant 0 : index
    %c0_67 = arith.constant 0 : index
    %c0_68 = arith.constant 0 : index
    %68 = vector.load %arg11[%c0_66, %c0_67, %c0_68] : memref<3x32x16xf32, #tpu.memory_space<vmem>>, vector<1x32x16xf32>
    %69 = vector.shape_cast %68 : vector<1x32x16xf32> to vector<32x16xf32>
    %cst_69 = arith.constant dense<0.000000e+00> : vector<4x16xf32>
    %70 = tpu.matmul %67, %69, %cst_69 {dimension_numbers = #tpu.dot_dimension_numbers<[1], [0], [0], [1], [0, 0, 1, 1], [], []>} : vector<4x32xf32>, vector<32x16xf32>, vector<4x16xf32> -> vector<4x16xf32>
    %c1_70 = arith.constant 1 : index
    %c0_71 = arith.constant 0 : index
    %c0_72 = arith.constant 0 : index
    %71 = vector.load %arg10[%c1_70, %c0_71, %c0_72] : memref<3x4x8xf32, #tpu.memory_space<vmem>>, vector<1x4x8xf32>
    %72 = vector.shape_cast %71 : vector<1x4x8xf32> to vector<4x8xf32>
    %cst_73 = arith.constant dense<0.000000e+00> : vector<4x32xf32>
    %73 = tpu.matmul %72, %64, %cst_73 {dimension_numbers = #tpu.dot_dimension_numbers<[1], [0], [0], [1], [0, 0, 1, 1], [], []>} : vector<4x8xf32>, vector<8x32xf32>, vector<4x32xf32> -> vector<4x32xf32>
    %c1_74 = arith.constant 1 : index
    %c0_75 = arith.constant 0 : index
    %c0_76 = arith.constant 0 : index
    %74 = vector.load %arg11[%c1_74, %c0_75, %c0_76] : memref<3x32x16xf32, #tpu.memory_space<vmem>>, vector<1x32x16xf32>
    %75 = vector.shape_cast %74 : vector<1x32x16xf32> to vector<32x16xf32>
    %cst_77 = arith.constant dense<0.000000e+00> : vector<4x16xf32>
    %76 = tpu.matmul %73, %75, %cst_77 {dimension_numbers = #tpu.dot_dimension_numbers<[1], [0], [0], [1], [0, 0, 1, 1], [], []>} : vector<4x32xf32>, vector<32x16xf32>, vector<4x16xf32> -> vector<4x16xf32>
    %77 = arith.addf %70, %76 : vector<4x16xf32>
    %c2_78 = arith.constant 2 : index
    %c0_79 = arith.constant 0 : index
    %c0_80 = arith.constant 0 : index
    %78 = vector.load %arg10[%c2_78, %c0_79, %c0_80] : memref<3x4x8xf32, #tpu.memory_space<vmem>>, vector<1x4x8xf32>
    %79 = vector.shape_cast %78 : vector<1x4x8xf32> to vector<4x8xf32>
    %cst_81 = arith.constant dense<0.000000e+00> : vector<4x32xf32>
    %80 = tpu.matmul %79, %64, %cst_81 {dimension_numbers = #tpu.dot_dimension_numbers<[1], [0], [0], [1], [0, 0, 1, 1], [], []>} : vector<4x8xf32>, vector<8x32xf32>, vector<4x32xf32> -> vector<4x32xf32>
    %c2_82 = arith.constant 2 : index
    %c0_83 = arith.constant 0 : index
    %c0_84 = arith.constant 0 : index
    %81 = vector.load %arg11[%c2_82, %c0_83, %c0_84] : memref<3x32x16xf32, #tpu.memory_space<vmem>>, vector<1x32x16xf32>
    %82 = vector.shape_cast %81 : vector<1x32x16xf32> to vector<32x16xf32>
    %cst_85 = arith.constant dense<0.000000e+00> : vector<4x16xf32>
    %83 = tpu.matmul %80, %82, %cst_85 {dimension_numbers = #tpu.dot_dimension_numbers<[1], [0], [0], [1], [0, 0, 1, 1], [], []>} : vector<4x32xf32>, vector<32x16xf32>, vector<4x16xf32> -> vector<4x16xf32>
    %84 = arith.addf %77, %83 : vector<4x16xf32>
    %c0_86 = arith.constant 0 : index
    %c0_87 = arith.constant 0 : index
    %85 = vector.load %arg12[%c0_86, %c0_87] : memref<1x16xf32, #tpu.memory_space<vmem>>, vector<1x16xf32>
    %86 = vector.broadcast %85 : vector<1x16xf32> to vector<4x16xf32>
    %87 = arith.addf %84, %86 : vector<4x16xf32>
    %cst_88 = arith.constant 0.000000e+00 : f32
    %cst_89 = arith.constant 6.000000e+00 : f32
    %88 = vector.broadcast %cst_88 : f32 to vector<4x16xf32>
    %89 = arith.maximumf %88, %87 : vector<4x16xf32>
    %90 = vector.broadcast %cst_89 : f32 to vector<4x16xf32>
    %91 = arith.minimumf %90, %89 : vector<4x16xf32>
    %c0_90 = arith.constant 0 : index
    %c0_91 = arith.constant 0 : index
    %92 = vector.load %arg13[%c0_90, %c0_91] : memref<16x32xf32, #tpu.memory_space<vmem>>, vector<16x32xf32>
    %cst_92 = arith.constant dense<0.000000e+00> : vector<4x32xf32>
    %93 = tpu.matmul %91, %92, %cst_92 {dimension_numbers = #tpu.dot_dimension_numbers<[1], [0], [0], [1], [0, 0, 1, 1], [], []>} : vector<4x16xf32>, vector<16x32xf32>, vector<4x32xf32> -> vector<4x32xf32>
    %c0_93 = arith.constant 0 : index
    %c0_94 = arith.constant 0 : index
    %94 = vector.load %arg14[%c0_93, %c0_94] : memref<1x32xf32, #tpu.memory_space<vmem>>, vector<1x32xf32>
    %95 = vector.broadcast %94 : vector<1x32xf32> to vector<4x32xf32>
    %96 = arith.addf %93, %95 : vector<4x32xf32>
    %cst_95 = arith.constant 0.000000e+00 : f32
    %cst_96 = arith.constant 6.000000e+00 : f32
    %97 = vector.broadcast %cst_95 : f32 to vector<4x32xf32>
    %98 = arith.maximumf %97, %96 : vector<4x32xf32>
    %99 = vector.broadcast %cst_96 : f32 to vector<4x32xf32>
    %100 = arith.minimumf %99, %98 : vector<4x32xf32>
    %c0_97 = arith.constant 0 : index
    %c0_98 = arith.constant 0 : index
    %c0_99 = arith.constant 0 : index
    %101 = vector.load %arg15[%c0_97, %c0_98, %c0_99] : memref<3x2x4xf32, #tpu.memory_space<vmem>>, vector<1x2x4xf32>
    %102 = vector.shape_cast %101 : vector<1x2x4xf32> to vector<2x4xf32>
    %cst_100 = arith.constant dense<0.000000e+00> : vector<2x32xf32>
    %103 = tpu.matmul %102, %100, %cst_100 {dimension_numbers = #tpu.dot_dimension_numbers<[1], [0], [0], [1], [0, 0, 1, 1], [], []>} : vector<2x4xf32>, vector<4x32xf32>, vector<2x32xf32> -> vector<2x32xf32>
    %c0_101 = arith.constant 0 : index
    %c0_102 = arith.constant 0 : index
    %c0_103 = arith.constant 0 : index
    %104 = vector.load %arg16[%c0_101, %c0_102, %c0_103] : memref<3x32x16xf32, #tpu.memory_space<vmem>>, vector<1x32x16xf32>
    %105 = vector.shape_cast %104 : vector<1x32x16xf32> to vector<32x16xf32>
    %cst_104 = arith.constant dense<0.000000e+00> : vector<2x16xf32>
    %106 = tpu.matmul %103, %105, %cst_104 {dimension_numbers = #tpu.dot_dimension_numbers<[1], [0], [0], [1], [0, 0, 1, 1], [], []>} : vector<2x32xf32>, vector<32x16xf32>, vector<2x16xf32> -> vector<2x16xf32>
    %c1_105 = arith.constant 1 : index
    %c0_106 = arith.constant 0 : index
    %c0_107 = arith.constant 0 : index
    %107 = vector.load %arg15[%c1_105, %c0_106, %c0_107] : memref<3x2x4xf32, #tpu.memory_space<vmem>>, vector<1x2x4xf32>
    %108 = vector.shape_cast %107 : vector<1x2x4xf32> to vector<2x4xf32>
    %cst_108 = arith.constant dense<0.000000e+00> : vector<2x32xf32>
    %109 = tpu.matmul %108, %100, %cst_108 {dimension_numbers = #tpu.dot_dimension_numbers<[1], [0], [0], [1], [0, 0, 1, 1], [], []>} : vector<2x4xf32>, vector<4x32xf32>, vector<2x32xf32> -> vector<2x32xf32>
    %c1_109 = arith.constant 1 : index
    %c0_110 = arith.constant 0 : index
    %c0_111 = arith.constant 0 : index
    %110 = vector.load %arg16[%c1_109, %c0_110, %c0_111] : memref<3x32x16xf32, #tpu.memory_space<vmem>>, vector<1x32x16xf32>
    %111 = vector.shape_cast %110 : vector<1x32x16xf32> to vector<32x16xf32>
    %cst_112 = arith.constant dense<0.000000e+00> : vector<2x16xf32>
    %112 = tpu.matmul %109, %111, %cst_112 {dimension_numbers = #tpu.dot_dimension_numbers<[1], [0], [0], [1], [0, 0, 1, 1], [], []>} : vector<2x32xf32>, vector<32x16xf32>, vector<2x16xf32> -> vector<2x16xf32>
    %113 = arith.addf %106, %112 : vector<2x16xf32>
    %c2_113 = arith.constant 2 : index
    %c0_114 = arith.constant 0 : index
    %c0_115 = arith.constant 0 : index
    %114 = vector.load %arg15[%c2_113, %c0_114, %c0_115] : memref<3x2x4xf32, #tpu.memory_space<vmem>>, vector<1x2x4xf32>
    %115 = vector.shape_cast %114 : vector<1x2x4xf32> to vector<2x4xf32>
    %cst_116 = arith.constant dense<0.000000e+00> : vector<2x32xf32>
    %116 = tpu.matmul %115, %100, %cst_116 {dimension_numbers = #tpu.dot_dimension_numbers<[1], [0], [0], [1], [0, 0, 1, 1], [], []>} : vector<2x4xf32>, vector<4x32xf32>, vector<2x32xf32> -> vector<2x32xf32>
    %c2_117 = arith.constant 2 : index
    %c0_118 = arith.constant 0 : index
    %c0_119 = arith.constant 0 : index
    %117 = vector.load %arg16[%c2_117, %c0_118, %c0_119] : memref<3x32x16xf32, #tpu.memory_space<vmem>>, vector<1x32x16xf32>
    %118 = vector.shape_cast %117 : vector<1x32x16xf32> to vector<32x16xf32>
    %cst_120 = arith.constant dense<0.000000e+00> : vector<2x16xf32>
    %119 = tpu.matmul %116, %118, %cst_120 {dimension_numbers = #tpu.dot_dimension_numbers<[1], [0], [0], [1], [0, 0, 1, 1], [], []>} : vector<2x32xf32>, vector<32x16xf32>, vector<2x16xf32> -> vector<2x16xf32>
    %120 = arith.addf %113, %119 : vector<2x16xf32>
    %c0_121 = arith.constant 0 : index
    %c0_122 = arith.constant 0 : index
    %121 = vector.load %arg17[%c0_121, %c0_122] : memref<1x16xf32, #tpu.memory_space<vmem>>, vector<1x16xf32>
    %122 = vector.broadcast %121 : vector<1x16xf32> to vector<2x16xf32>
    %123 = arith.addf %120, %122 : vector<2x16xf32>
    %cst_123 = arith.constant 0.000000e+00 : f32
    %cst_124 = arith.constant 6.000000e+00 : f32
    %124 = vector.broadcast %cst_123 : f32 to vector<2x16xf32>
    %125 = arith.maximumf %124, %123 : vector<2x16xf32>
    %126 = vector.broadcast %cst_124 : f32 to vector<2x16xf32>
    %127 = arith.minimumf %126, %125 : vector<2x16xf32>
    %c0_125 = arith.constant 0 : index
    %c0_126 = arith.constant 0 : index
    %128 = vector.load %arg18[%c0_125, %c0_126] : memref<16x32xf32, #tpu.memory_space<vmem>>, vector<16x32xf32>
    %cst_127 = arith.constant dense<0.000000e+00> : vector<2x32xf32>
    %129 = tpu.matmul %127, %128, %cst_127 {dimension_numbers = #tpu.dot_dimension_numbers<[1], [0], [0], [1], [0, 0, 1, 1], [], []>} : vector<2x16xf32>, vector<16x32xf32>, vector<2x32xf32> -> vector<2x32xf32>
    %c0_128 = arith.constant 0 : index
    %c0_129 = arith.constant 0 : index
    %130 = vector.load %arg19[%c0_128, %c0_129] : memref<1x32xf32, #tpu.memory_space<vmem>>, vector<1x32xf32>
    %131 = vector.broadcast %130 : vector<1x32xf32> to vector<2x32xf32>
    %132 = arith.addf %129, %131 : vector<2x32xf32>
    %cst_130 = arith.constant 0.000000e+00 : f32
    %cst_131 = arith.constant 6.000000e+00 : f32
    %133 = vector.broadcast %cst_130 : f32 to vector<2x32xf32>
    %134 = arith.maximumf %133, %132 : vector<2x32xf32>
    %135 = vector.broadcast %cst_131 : f32 to vector<2x32xf32>
    %136 = arith.minimumf %135, %134 : vector<2x32xf32>
    %137 = vector.extract_strided_slice %136 {offsets = [0, 0], sizes = [1, 32], strides = [1, 1]} : vector<2x32xf32> to vector<1x32xf32>
    %c0_132 = arith.constant 0 : index
    %c0_133 = arith.constant 0 : index
    %c0_134 = arith.constant 0 : index
    %138 = vector.load %arg20[%c0_132, %c0_133, %c0_134] : memref<2x32x34xf32, #tpu.memory_space<vmem>>, vector<1x32x34xf32>
    %139 = vector.shape_cast %138 : vector<1x32x34xf32> to vector<32x34xf32>
    %cst_135 = arith.constant dense<0.000000e+00> : vector<1x34xf32>
    %140 = tpu.matmul %137, %139, %cst_135 {dimension_numbers = #tpu.dot_dimension_numbers<[1], [0], [0], [1], [0, 0, 1, 1], [], []>} : vector<1x32xf32>, vector<32x34xf32>, vector<1x34xf32> -> vector<1x34xf32>
    %141 = vector.extract_strided_slice %136 {offsets = [1, 0], sizes = [1, 32], strides = [1, 1]} : vector<2x32xf32> to vector<1x32xf32>
    %c1_136 = arith.constant 1 : index
    %c0_137 = arith.constant 0 : index
    %c0_138 = arith.constant 0 : index
    %142 = vector.load %arg20[%c1_136, %c0_137, %c0_138] : memref<2x32x34xf32, #tpu.memory_space<vmem>>, vector<1x32x34xf32>
    %143 = vector.shape_cast %142 : vector<1x32x34xf32> to vector<32x34xf32>
    %cst_139 = arith.constant dense<0.000000e+00> : vector<1x34xf32>
    %144 = tpu.matmul %141, %143, %cst_139 {dimension_numbers = #tpu.dot_dimension_numbers<[1], [0], [0], [1], [0, 0, 1, 1], [], []>} : vector<1x32xf32>, vector<32x34xf32>, vector<1x34xf32> -> vector<1x34xf32>
    %145 = arith.addf %140, %144 : vector<1x34xf32>
    %c0_140 = arith.constant 0 : index
    %c0_141 = arith.constant 0 : index
    %146 = vector.load %arg21[%c0_140, %c0_141] : memref<1x34xf32, #tpu.memory_space<vmem>>, vector<1x34xf32>
    %147 = arith.addf %145, %146 : vector<1x34xf32>
    %c0_142 = arith.constant 0 : index
    %c0_143 = arith.constant 0 : index
    %c0_144 = arith.constant 0 : index
    %148 = vector.load %arg22[%c0_142, %c0_143, %c0_144] : memref<1x1x34xf32, #tpu.memory_space<vmem>>, vector<1x1x34xf32>
    %149 = vector.shape_cast %148 : vector<1x1x34xf32> to vector<1x34xf32>
    %150 = vector.shape_cast %147 : vector<1x34xf32> to vector<1x1x34xf32>
    tpu.vector_store %arg22[%c0_142, %c0_143, %c0_144], %150 {strides = array<i32>} : memref<1x1x34xf32, #tpu.memory_space<vmem>>, vector<1x1x34xf32>,
    return
  }
  func.func @transform_0(%arg0: i32) -> (i32, i32, i32) {
    %c0_i32 = arith.constant 0 : i32
    %c0_i32_0 = arith.constant 0 : i32
    %c0_i32_1 = arith.constant 0 : i32
    return %arg0, %c0_i32, %c0_i32_0 : i32, i32, i32
  }
  func.func @transform_1(%arg0: i32) -> (i32, i32, i32) {
    %c0_i32 = arith.constant 0 : i32
    %c0_i32_0 = arith.constant 0 : i32
    %c0_i32_1 = arith.constant 0 : i32
    %c0_i32_2 = arith.constant 0 : i32
    return %c0_i32, %c0_i32_0, %c0_i32_1 : i32, i32, i32
  }
  func.func @transform_2(%arg0: i32) -> (i32, i32, i32) {
    %c0_i32 = arith.constant 0 : i32
    %c0_i32_0 = arith.constant 0 : i32
    %c0_i32_1 = arith.constant 0 : i32
    %c0_i32_2 = arith.constant 0 : i32
    return %c0_i32, %c0_i32_0, %c0_i32_1 : i32, i32, i32
  }
  func.func @transform_3(%arg0: i32) -> (i32, i32) {
    %c0_i32 = arith.constant 0 : i32
    %c0_i32_0 = arith.constant 0 : i32
    %c0_i32_1 = arith.constant 0 : i32
    return %c0_i32, %c0_i32_0 : i32, i32
  }
  func.func @transform_4(%arg0: i32) -> (i32, i32, i32) {
    %c0_i32 = arith.constant 0 : i32
    %c0_i32_0 = arith.constant 0 : i32
    %c0_i32_1 = arith.constant 0 : i32
    %c0_i32_2 = arith.constant 0 : i32
    return %c0_i32, %c0_i32_0, %c0_i32_1 : i32, i32, i32
  }
  func.func @transform_5(%arg0: i32) -> (i32, i32, i32) {
    %c0_i32 = arith.constant 0 : i32
    %c0_i32_0 = arith.constant 0 : i32
    %c0_i32_1 = arith.constant 0 : i32
    %c0_i32_2 = arith.constant 0 : i32
    return %c0_i32, %c0_i32_0, %c0_i32_1 : i32, i32, i32
  }
  func.func @transform_6(%arg0: i32) -> (i32, i32) {
    %c0_i32 = arith.constant 0 : i32
    %c0_i32_0 = arith.constant 0 : i32
    %c0_i32_1 = arith.constant 0 : i32
    return %c0_i32, %c0_i32_0 : i32, i32
  }
  func.func @transform_7(%arg0: i32) -> (i32, i32) {
    %c0_i32 = arith.constant 0 : i32
    %c0_i32_0 = arith.constant 0 : i32
    %c0_i32_1 = arith.constant 0 : i32
    return %c0_i32, %c0_i32_0 : i32, i32
  }
  func.func @transform_8(%arg0: i32) -> (i32, i32) {
    %c0_i32 = arith.constant 0 : i32
    %c0_i32_0 = arith.constant 0 : i32
    %c0_i32_1 = arith.constant 0 : i32
    return %c0_i32, %c0_i32_0 : i32, i32
  }
  func.func @transform_9(%arg0: i32) -> (i32, i32, i32) {
    %c0_i32 = arith.constant 0 : i32
    %c0_i32_0 = arith.constant 0 : i32
    %c0_i32_1 = arith.constant 0 : i32
    %c0_i32_2 = arith.constant 0 : i32
    return %c0_i32, %c0_i32_0, %c0_i32_1 : i32, i32, i32
  }
  func.func @transform_10(%arg0: i32) -> (i32, i32, i32) {
    %c0_i32 = arith.constant 0 : i32
    %c0_i32_0 = arith.constant 0 : i32
    %c0_i32_1 = arith.constant 0 : i32
    %c0_i32_2 = arith.constant 0 : i32
    return %c0_i32, %c0_i32_0, %c0_i32_1 : i32, i32, i32
  }
  func.func @transform_11(%arg0: i32) -> (i32, i32) {
    %c0_i32 = arith.constant 0 : i32
    %c0_i32_0 = arith.constant 0 : i32
    %c0_i32_1 = arith.constant 0 : i32
    return %c0_i32, %c0_i32_0 : i32, i32
  }
  func.func @transform_12(%arg0: i32) -> (i32, i32) {
    %c0_i32 = arith.constant 0 : i32
    %c0_i32_0 = arith.constant 0 : i32
    %c0_i32_1 = arith.constant 0 : i32
    return %c0_i32, %c0_i32_0 : i32, i32
  }
  func.func @transform_13(%arg0: i32) -> (i32, i32) {
    %c0_i32 = arith.constant 0 : i32
    %c0_i32_0 = arith.constant 0 : i32
    %c0_i32_1 = arith.constant 0 : i32
    return %c0_i32, %c0_i32_0 : i32, i32
  }
  func.func @transform_14(%arg0: i32) -> (i32, i32, i32) {
    %c0_i32 = arith.constant 0 : i32
    %c0_i32_0 = arith.constant 0 : i32
    %c0_i32_1 = arith.constant 0 : i32
    %c0_i32_2 = arith.constant 0 : i32
    return %c0_i32, %c0_i32_0, %c0_i32_1 : i32, i32, i32
  }
  func.func @transform_15(%arg0: i32) -> (i32, i32, i32) {
    %c0_i32 = arith.constant 0 : i32
    %c0_i32_0 = arith.constant 0 : i32
    %c0_i32_1 = arith.constant 0 : i32
    %c0_i32_2 = arith.constant 0 : i32
    return %c0_i32, %c0_i32_0, %c0_i32_1 : i32, i32, i32
  }
  func.func @transform_16(%arg0: i32) -> (i32, i32) {
    %c0_i32 = arith.constant 0 : i32
    %c0_i32_0 = arith.constant 0 : i32
    %c0_i32_1 = arith.constant 0 : i32
    return %c0_i32, %c0_i32_0 : i32, i32
  }
  func.func @transform_17(%arg0: i32) -> (i32, i32) {
    %c0_i32 = arith.constant 0 : i32
    %c0_i32_0 = arith.constant 0 : i32
    %c0_i32_1 = arith.constant 0 : i32
    return %c0_i32, %c0_i32_0 : i32, i32
  }
  func.func @transform_18(%arg0: i32) -> (i32, i32) {
    %c0_i32 = arith.constant 0 : i32
    %c0_i32_0 = arith.constant 0 : i32
    %c0_i32_1 = arith.constant 0 : i32
    return %c0_i32, %c0_i32_0 : i32, i32
  }
  func.func @transform_19(%arg0: i32) -> (i32, i32, i32) {
    %c0_i32 = arith.constant 0 : i32
    %c0_i32_0 = arith.constant 0 : i32
    %c0_i32_1 = arith.constant 0 : i32
    %c0_i32_2 = arith.constant 0 : i32
    return %c0_i32, %c0_i32_0, %c0_i32_1 : i32, i32, i32
  }
  func.func @transform_20(%arg0: i32) -> (i32, i32) {
    %c0_i32 = arith.constant 0 : i32
    %c0_i32_0 = arith.constant 0 : i32
    %c0_i32_1 = arith.constant 0 : i32
    return %c0_i32, %c0_i32_0 : i32, i32
  }
  func.func @transform_21(%arg0: i32) -> (i32, i32, i32) {
    %c0_i32 = arith.constant 0 : i32
    %c0_i32_0 = arith.constant 0 : i32
    %c0_i32_1 = arith.constant 0 : i32
    return %arg0, %c0_i32, %c0_i32_0 : i32, i32, i32
  }
}

</mosaic_0001>

<bundles_post_ra>
// kernel: net_forward.1
= control target key start
LH: loop header
LB: loop body
LE: loop exit
PB: predicated region body
PF: predicated region fallthrough
CT: control target
= control target key end

     0   :  { %s4388_s0 = inlined_call_operand.vmem [shape: f32[2,32,32], index: 0, kind: input, shape index: {}]   ;;  %s4389_s1 = inlined_call_operand.vmem [shape: f32[3,16,32], index: 1, kind: input, shape index: {}]   ;;  %s4390_s2 = inlined_call_operand.vmem [shape: f32[3,32,64], index: 2, kind: input, shape index: {}]   ;;  %s4391_s3 = inlined_call_operand.vmem [shape: f32[1,64], index: 3, kind: input, shape index: {}]   ;;  %s4392_s4 = inlined_call_operand.vmem [shape: f32[3,8,16], index: 4, kind: input, shape index: {}]   ;;  %s4393_s5 = inlined_call_operand.vmem [shape: f32[3,64,32], index: 5, kind: input, shape index: {}]   ;;  %s4394_s6 = inlined_call_operand.vmem [shape: f32[1,32], index: 6, kind: input, shape index: {}]   ;;  %s4395_s7 = inlined_call_operand.vmem [shape: f32[32,32], index: 7, kind: input, shape index: {}]   ;;  %s4396_s8 = inlined_call_operand.vmem [shape: f32[1,32], index: 8, kind: input, shape index: {}]   ;;  %s4397_s9 = inlined_call_operand.vmem [shape: f32[3,4,8], index: 9, kind: input, shape index: {}]   ;;  %s4398_s10 = inlined_call_operand.vmem [shape: f32[3,32,16], index: 10, kind: input, shape index: {}]   ;;  %s4399_s11 = inlined_call_operand.vmem [shape: f32[1,16], index: 11, kind: input, shape index: {}]   ;;  %s4400_s12 = inlined_call_operand.vmem [shape: f32[16,32], index: 12, kind: input, shape index: {}]   ;;  %s4401_s13 = inlined_call_operand.vmem [shape: f32[1,32], index: 13, kind: input, shape index: {}]   ;;  %s4402_s14 = inlined_call_operand.vmem [shape: f32[3,2,4], index: 14, kind: input, shape index: {}]   ;;  %s4403_s15 = inlined_call_operand.vmem [shape: f32[3,32,16], index: 15, kind: input, shape index: {}]   ;;  %s4404_s16 = inlined_call_operand.vmem [shape: f32[1,16], index: 16, kind: input, shape index: {}]   ;;  %s4405_s17 = inlined_call_operand.vmem [shape: f32[16,32], index: 17, kind: input, shape index: {}]   ;;  %s4406_s18 = inlined_call_operand.vmem [shape: f32[1,32], index: 18, kind: input, shape index: {}]   ;;  %s4407_s19 = inlined_call_operand.vmem [shape: f32[2,32,34], index: 19, kind: input, shape index: {}]   ;;  %s4408_s20 = inlined_call_operand.vmem [shape: f32[1,34], index: 20, kind: input, shape index: {}]   ;;  %s4409_s21 = inlined_call_operand.hbm [shape: f32[2,1,34], index: 21, kind: output, shape index: {}]  }
   0x1   :  { %4422 = sst [smem:[#allocation10_spill]] %s4388_s0 }
   0x2   :  { %4423 = sst [smem:[#allocation11_spill]] %s4389_s1 }
   0x3   :  { %4424 = sst [smem:[#allocation12_spill]] %s4390_s2 }
   0x4   :  { %4425 = sst [smem:[#allocation13_spill]] %s4391_s3 }
   0x5   :  { %4426 = sst [smem:[#allocation14_spill]] %s4392_s4 }
   0x6   :  { %4427 = sst [smem:[#allocation15_spill]] %s4393_s5 }
   0x7   :  { %4428 = sst [smem:[#allocation16_spill]] %s4394_s6 }
   0x8   :  { %4429 = sst [smem:[#allocation17_spill]] %s4395_s7 }
   0x9   :  { %26 = vsyncpa [#allocation3], 0 }
   0xa   :  { %28 = vsyncpa [#allocation3 + $0x1], 0  ;;  %s3834_s2 = smov 0   ;;  %s3836_s25 = smov 0  }
   0xb   :  { %s3838_s26 = smov 0   ;;  %s3840_s27 = smov 0  }
   0xc LB: > { %4430 = sst [smem:[#allocation5_spill]] %s3707_s2  ;;  %s3855_s3 = sadd.s32 4294967295, %s3719_s27   ;;  %s3719_s27 = sphi %s3840_s27, %s4447_s27   ;;  %s3715_s26 = sphi %s3838_s26, %s4449_s26   ;;  %s3711_s25 = sphi %s3836_s25, %s4451_s25   ;;  %s3707_s2 = sphi %s3834_s2, %s4450_s2  }
   0xd   : > { %4431 = sst [smem:[#allocation6_spill]] %s3715_s26  ;;  %s3087_s28 = sadd.s32 4294967294, %s3719_s27  }
   0xe   : > { %s3859_s29 = sadd.s32 1, %s3719_s27   ;;  %s487_s0 = sadd.s32 1, %s3715_s26 }
   0xf   : > { %4432 = sst [smem:[#allocation7_spill]] %s3859_s29  ;;  %s484_s4 = ssub.s32 %s3719_s27, %s3859_s29 }
  0x10   : > { %p497_p0 = scmp.ne.s32.totalorder %s3715_s26, %s3711_s25  ;;  %p485_p1 = scmp.eq.s32.totalorder %s484_s4, 0 }
  0x11   : > { %p498_p2 = scmp.eq.s32.totalorder %s3855_s3, 1  ;;  %p503_p3 = scmp.ne.s32.totalorder %s3711_s25, %s3707_s2 }
  0x12   : > { %p504_p4 = scmp.eq.s32.totalorder %s3087_s28, 1  ;;  %p3090_p7 = scmp.ge.s32.totalorder %s3719_s27, 1 }
  0x13   : > { %s3870_s30 = scalar_select %p485_p1, %s3715_s26, %s487_s0  }
  0x14   : > { %p3872_p5 = por %p498_p2, %p497_p0  ;;  %p3876_p6 = por %p504_p4, %p503_p3 }
  0x15   : > { %4433 = sst [smem:[#allocation8_spill]] %s3870_s30  ;;  %p590_p8 = scmp.lt.s32.totalorder %s3719_s27, 3 }
  0x16   : > { %s4435_s22 = scalar_select %p3876_p6, 1, 0 }
  0x17   : > { %p591_p9 = pnand %p3090_p7, %p590_p8 }
  0x18   : > { %4436 = sst [smem:[#allocation9_spill]] %s4435_s22  ;;  %p649_p10 = scmp.lt.s32.totalorder (!%p591_p9), %s3855_s3, 1 }
  0x19   : > { %594 = sbr.rel (%p591_p9) target bundleno = 3235 (0xca3), region = 104  ;;  %s4437_s24 = sld [smem:[#allocation11_spill]] (!%p591_p9) }
  0x1a   : > { %s4438_s22 = sld [smem:[#allocation10_spill]] (!%p591_p9)  ;;  %s3192_s23 = sshll.u32 (!%p591_p9), %s3855_s3, 4 }
  0x1b   : > { %s4439_s28 = sld [smem:[#allocation12_spill]] (!%p591_p9) }
  0x1c   : > { %s4441_s1 = sld [smem:[#allocation14_spill]] (!%p591_p9) }
  0x1d   : > { %s4442_s0 = sld [smem:[#allocation15_spill]] (!%p591_p9) }
  0x1e   : > { %vm660_vm0 = vcmask 261120   ;;  %s650_s4 = scalar_select %p649_p10, %s3855_s3, 1  ;;  %v3721_v30 = vmov 0.0   ;;  %vm3722_vm1 = vmmov 0   ;;  %vm1183_vm2 = vcmask 130048  }
  0x1f   : > { %v658_v0 = vld [vmem:[%s4437_s24] sm:$0xff]  ;;  %v3095_v1 = vld [vmem:[%s4437_s24 + $0x10] sm:$0xff]  ;;  %v659_v6 = vld [vmem:[%s4437_s24 + $0x8] sm:$0xff]  ;;  %vm1349_vm3 = vcmask 523264   ;;  %s4443_s7 = sld [smem:[#allocation17_spill]]  ;;  %vm1751_vm4 = vcmask 64512  }
  0x20   : > { %3339 = vmatprep.mubr.msk.f32.mxu0 %vm660_vm0, %v658_v0  ;;  %3350 = vmatprep.mubr.msk.f32.mxu1 %vm660_vm0, %v3095_v1  ;;  %s3195_s30 = sshll.u32 %s650_s4, 5  ;;  %v3096_v7 = vld [vmem:[%s4437_s24 + $0x18] sm:$0xff]  ;;  %v3107_v20 = vld [vmem:[%s4437_s24 + $0x20] sm:$0xff]  ;;  %v3108_v21 = vld [vmem:[%s4437_s24 + $0x28] sm:$0xff]  ;;  %s4444_s6 = sld [smem:[#allocation16_spill]]  ;;  %vm2308_vm5 = vcmask 1043456  }
  0x21   : > { %s653_s2 = scalar_lea.vmem %s4438_s22, %s3195_s30  ;;  %v3102_v8 = vld [vmem:[%s4439_s28 + $0x38] sm:$0xff]  ;;  %v3101_v10 = vld [vmem:[%s4439_s28 + $0x30] sm:$0xff]  ;;  %v3100_v12 = vld [vmem:[%s4439_s28 + $0x28] sm:$0xff]  ;;  %vm2304_vm6 = vcmask 31744   ;;  %vm3017_vm7 = vcmask 270336   ;;  %s3723_s4 = smov [#allocation2]  }
  0x22   : > { %v657_v2 = vld [vmem:[%s653_s2 + $0x18] sm:$0xff]  ;;  %v656_v3 = vld [vmem:[%s653_s2 + $0x10] sm:$0xff]  ;;  %v655_v4 = vld [vmem:[%s653_s2 + $0x8] sm:$0xff]  ;;  %s3663_s3 = sshll.u32 %s3723_s4, 4  ;;  %s3664_s3 = int_to_ptr.vmem [resolvable:$false] %s3663_s3 }
  0x23   : > { %3331 = vmatprep.subr.mxu0 %v657_v2  ;;  %3342 = vmatprep.subr.mxu1 %v657_v2  ;;  %v654_v5 = vld [vmem:[%s653_s2] sm:$0xff]  ;;  %v745_v9 = vld [vmem:[%s4439_s28 + $0x18] sm:$0xff]  ;;  %v744_v11 = vld [vmem:[%s4439_s28 + $0x10] sm:$0xff]  ;;  %s4440_s2 = sld [smem:[#allocation13_spill]]  ;;  %s3665_s24 = scalar_lea.vmem %s3664_s3, 32 }
  0x24   : > { %3332 = vmatpush3.msra.mxu0 %v657_v2  ;;  %3343 = vmatpush3.msra.mxu1 %v657_v2  ;;  %v743_v13 = vld [vmem:[%s4439_s28 + $0x8] sm:$0xff]  ;;  %v3099_v14 = vld [vmem:[%s4439_s28 + $0x20] sm:$0xff]  ;;  %v3114_v22 = vld [vmem:[%s4439_s28 + $0x58] sm:$0xff] }
  0x25   : > { %3333 = vmatprep.subr.mxu0 %v656_v3  ;;  %3344 = vmatprep.subr.mxu1 %v656_v3  ;;  %v742_v15 = vld [vmem:[%s4439_s28] sm:$0xff]  ;;  %v3113_v23 = vld [vmem:[%s4439_s28 + $0x50] sm:$0xff]  ;;  %v3112_v24 = vld [vmem:[%s4439_s28 + $0x48] sm:$0xff] }
  0x26   : > { %3334 = vmatpush3.msra.mxu0 %v656_v3  ;;  %3345 = vmatpush3.msra.mxu1 %v656_v3  ;;  %v3111_v25 = vld [vmem:[%s4439_s28 + $0x40] sm:$0xff]  ;;  %v3119_v47 = vld [vmem:[%s4441_s1 + $0x8] sm:$0xff]  ;;  %v3128_v48 = vld [vmem:[%s4442_s0 + $0x78] sm:$0xff] }
  0x27   : > { %3335 = vmatprep.subr.mxu0 %v655_v4  ;;  %3346 = vmatprep.subr.mxu1 %v655_v4  ;;  %v1182_v46 = vld [vmem:[%s4441_s1] sm:$0xff]  ;;  %v1264_v49 = vld [vmem:[%s4442_s0 + $0x38] sm:$0xff]  ;;  %v3127_v50 = vld [vmem:[%s4442_s0 + $0x70] sm:$0xff] }
  0x28   : > { %3336 = vmatpush3.msra.mxu0 %v655_v4  ;;  %3347 = vmatpush3.msra.mxu1 %v655_v4  ;;  %v1263_v51 = vld [vmem:[%s4442_s0 + $0x30] sm:$0xff]  ;;  %v3126_v52 = vld [vmem:[%s4442_s0 + $0x68] sm:$0xff]  ;;  %v3125_v54 = vld [vmem:[%s4442_s0 + $0x60] sm:$0xff] }
  0x29   : > { %3337 = vmatprep.subr.mxu0 %v654_v5  ;;  %3348 = vmatprep.subr.mxu1 %v654_v5  ;;  %v3117_v35 = vld [vmem:[%s4440_s2] ss:$0 sm:$0xff]  ;;  %v1262_v53 = vld [vmem:[%s4442_s0 + $0x28] sm:$0xff]  ;;  %v3124_v56 = vld [vmem:[%s4442_s0 + $0x58] sm:$0xff]  ;;  %s647_s2 = sand.u32 1, %s3711_s25  }
  0x2a   : > { %3338 = vmatpush3.msra.mxu0 %v654_v5  ;;  %3349 = vmatpush3.msra.mxu1 %v654_v5  ;;  %v1261_v55 = vld [vmem:[%s4442_s0 + $0x20] sm:$0xff]  ;;  %v1260_v57 = vld [vmem:[%s4442_s0 + $0x18] sm:$0xff]  ;;  %v3123_v58 = vld [vmem:[%s4442_s0 + $0x50] sm:$0xff]  ;;  %s648_s26 = scalar_lea.vmem [#allocation2], %s647_s2 }
  0x2b   : > { %3340 = vmatmul.mubr.msk.f32.vlgmr.msra.gmra.mxu0 %vm660_vm0, %v659_v6  ;;  %3351 = vmatmul.mubr.msk.f32.vlgmr.msra.gmra.mxu1 %vm660_vm0, %v3096_v7  ;;  %v1259_v59 = vld [vmem:[%s4442_s0 + $0x10] sm:$0xff]  ;;  %v3122_v60 = vld [vmem:[%s4442_s0 + $0x48] sm:$0xff]  ;;  %v3121_v62 = vld [vmem:[%s4442_s0 + $0x40] sm:$0xff]  ;;  %s3032_s29 = sshll.u32 %s648_s26, 4  ;;  %s3033_s29 = int_to_ptr.vmem [resolvable:$true] %s3032_s29 }
  0x2c   : > { %3353 = vmatprep.subr.mxu0 %v3102_v8  ;;  %3364 = vmatprep.subr.mxu1 %v745_v9  ;;  %v1258_v61 = vld [vmem:[%s4442_s0 + $0x8] sm:$0xff]  ;;  %v1257_v63 = vld [vmem:[%s4442_s0] sm:$0xff]  ;;  %v3139_v6 = vld [vmem:[%s4442_s0 + $0xb0] sm:$0xff]  ;;  %p3666_p0 = scmp.lt.s32.totalorder %s3033_s29, %s3664_s3 }
  0x2d   : > { %3354 = vmatpush3.msra.mxu0 %v3102_v8  ;;  %3365 = vmatpush3.msra.mxu1 %v745_v9  ;;  %v3138_v7 = vld [vmem:[%s4442_s0 + $0xa8] sm:$0xff]  ;;  %v3137_v8 = vld [vmem:[%s4442_s0 + $0xa0] sm:$0xff]  ;;  %v3136_v9 = vld [vmem:[%s4442_s0 + $0x98] sm:$0xff] }
  0x2e   : > { %3355 = vmatprep.subr.mxu0 %v3101_v10  ;;  %3366 = vmatprep.subr.mxu1 %v744_v11 }
  0x2f   : > { %3356 = vmatpush3.msra.mxu0 %v3101_v10  ;;  %3367 = vmatpush3.msra.mxu1 %v744_v11  ;;  %v3135_v10 = vld [vmem:[%s4442_s0 + $0x90] sm:$0xff]  ;;  %v3134_v11 = vld [vmem:[%s4442_s0 + $0x88] sm:$0xff] }
  0x30   : > { %3357 = vmatprep.subr.mxu0 %v3100_v12  ;;  %3368 = vmatprep.subr.mxu1 %v743_v13 }
  0x31   : > { %3358 = vmatpush3.msra.mxu0 %v3100_v12  ;;  %3369 = vmatpush3.msra.mxu1 %v743_v13  ;;  %v3133_v12 = vld [vmem:[%s4442_s0 + $0x80] sm:$0xff] }
  0x32   : > { %3359 = vmatprep.subr.mxu0 %v3099_v14  ;;  %3370 = vmatprep.subr.mxu1 %v742_v15 }
  0x33   : > { %3360 = vmatpush3.msra.mxu0 %v3099_v14  ;;  %3371 = vmatpush3.msra.mxu1 %v742_v15 }
  0x34   : > { %3375 = vmatprep.subr.mxu0 %v657_v2  ;;  %3386 = vmatprep.subr.mxu1 %v3114_v22 }
  0xeb   : > { %v3341_v16 = vpop.f32.mrf.mxu0  ;;  %v3352_v17 = vpop.f32.mrf.mxu1 }
  0xed   : > { %v733_v18 = vpop.f32.mrf.mxu0  ;;  %v821_v19 = vpop.f32.mrf.mxu1 }
  0xee   : > { %3361 = vmatprep.mubr.msk.f32.mxu0 %vm660_vm0, %v821_v19  ;;  %3372 = vmatprep.mubr.msk.f32.mxu1 %vm660_vm0, %v733_v18 }
  0xef   : > { %3362 = vmatmul.mubr.msk.f32.vlgmr.msra.gmra.mxu0 %vm660_vm0, %v3352_v17  ;;  %3373 = vmatmul.mubr.msk.f32.vlgmr.msra.gmra.mxu1 %vm660_vm0, %v3341_v16 }
  0xf0   : > { %3376 = vmatpush3.msra.mxu0 %v657_v2  ;;  %3383 = vmatprep.mubr.msk.f32.mxu0 %vm660_vm0, %v3107_v20  ;;  %v3140_v2 = vld [vmem:[%s4442_s0 + $0xb8] sm:$0xff]  ;;  %s3030_s0 = scalar_lea.hbm %s4409_s21, %s3192_s23 }
  0xf1   : > { %3377 = vmatprep.subr.mxu0 %v656_v3  ;;  %3387 = vmatpush3.msra.mxu1 %v3114_v22  ;;  %v1667_v20 = vld [vmem:[%s4443_s7 + $0x18] sm:$0xff]  ;;  %v1665_v22 = vld [vmem:[%s4443_s7 + $0x8] sm:$0xff] }
  0xf2   : > { %3378 = vmatpush3.msra.mxu0 %v656_v3  ;;  %3388 = vmatprep.subr.mxu1 %v3113_v23 }
  0xf3   : > { %3379 = vmatprep.subr.mxu0 %v655_v4  ;;  %3389 = vmatpush3.msra.mxu1 %v3113_v23  ;;  %v1664_v23 = vld [vmem:[%s4443_s7] sm:$0xff] }
  0xf4   : > { %3380 = vmatpush3.msra.mxu0 %v655_v4  ;;  %3390 = vmatprep.subr.mxu1 %v3112_v24  ;;  %v3131_v4 = vld [vmem:[%s4441_s1 + $0x10] sm:$0xff]  ;;  %s3020_s1 = scalar_lea.sflag [#allocation3], %s647_s2 }
  0xf5   : > { %3381 = vmatprep.subr.mxu0 %v654_v5  ;;  %3391 = vmatpush3.msra.mxu1 %v3112_v24 }
  0xf6   : > { %3382 = vmatpush3.msra.mxu0 %v654_v5  ;;  %3392 = vmatprep.subr.mxu1 %v3111_v25 }
  0xf7   : > { %3384 = vmatmul.mubr.msk.f32.vlgmr.msra.gmra.mxu0 %vm660_vm0, %v3108_v21  ;;  %3393 = vmatpush3.msra.mxu1 %v3111_v25  ;;  %v1666_v21 = vld [vmem:[%s4443_s7 + $0x10] sm:$0xff]  ;;  %v3142_v25 = vld [vmem:[%s4444_s6] ss:$0 sm:$0xff]  ;;  %s3659_s6 = scalar_lea.vmem %s3033_s29, 16 }
  0xf8   : > { %3397 = vmatprep.subr.mxu0 %v3721_v30  ;;  %3404 = vmatprep.subr.mxu1 %v3721_v30  ;;  %p3660_p11 = scmp.ne.s32.totalorder %s3033_s29, %s3659_s6  ;;  %p3667_p1 = scmp.lt.s32.totalorder %s3665_s24, %s3659_s6 }
  0xf9   : > { %3401 = vmatprep.mubr.msk.f32.mxu0 %vm3722_vm1, %v3721_v30 }
  0xfa   : > { %p3661_p12 = pnand %p3660_p11, %p3872_p5  ;;  %p3668_p2 = por %p3667_p1, %p3666_p0 }
  0xfc   : > { %p3662_p13 = pneg %p3661_p12 }
  0xfe   : > { %p3669_p3 = pnand %p3668_p2, %p3662_p13 }
 0x1af   : > { %v3363_v26 = vpop.f32.mrf.mxu0  ;;  %v3374_v31 = vpop.f32.mrf.mxu1 }
 0x1b0   : > { %v994_v33 = vadd.f32 %v3374_v31, %v3363_v26 }
 0x1b1   : > { %v907_v27 = vpop.f32.mrf.mxu0  ;;  %v988_v32 = vpop.f32.mrf.mxu1 }
 0x1b2   : > { %v989_v36 = vadd.f32 %v988_v32, %v907_v27  ;;  %v3151_v32 = vld [vmem:[%s4398_s10 + $0x38] sm:$0xff] }
 0x1b7   : > { %v3385_v28 = vpop.f32.mrf.mxu0 }
 0x1b9   : > { %v1072_v29 = vpop.f32.mrf.mxu0 }
 0x1ba   : > { %3394 = vmatprep.mubr.msk.f32.mxu1 %vm660_vm0, %v1072_v29 }
 0x1bb   : > { %3395 = vmatmul.mubr.msk.f32.vlgmr.msra.gmra.mxu1 %vm660_vm0, %v3385_v28 }
 0x1bc   : > { %3408 = vmatprep.mubr.msk.f32.mxu1 %vm3722_vm1, %v3721_v30 }
 0x27b   : > { %v3396_v34 = vpop.f32.mrf.mxu1 }
 0x27c   : > { %v1168_v37 = vadd.f32 %v3396_v34, %v994_v33  ;;  %v3150_v33 = vld [vmem:[%s4398_s10 + $0x30] sm:$0xff]  ;;  %v3143_v34 = vld [vmem:[%s4396_s8] ss:$0 sm:$0xff] }
 0x27d   : > { %v1158_v38 = vpop.f32.mrf.mxu1 }
 0x27e   : > { %v1177_v39 = vadd.f32 %v3117_v35, %v1168_v37  ;;  %v1167_v40 = vadd.f32 %v1158_v38, %v989_v36 }
 0x280   : > { %v1179_v41 = vmax.f32 %v1177_v39, 0.0  ;;  %v1176_v42 = vadd.f32 %v3117_v35, %v1167_v40  ;;  %v1750_v40 = vld [vmem:[%s4397_s9] sm:$0xf] }
 0x282   : > { %v3962_v43 = vmin.f32 %v1179_v41, 6.0  ;;  %v1178_v44 = vmax.f32 %v1176_v42, 0.0  ;;  %v3146_v41 = vld [vmem:[%s4397_s9 + $0x4] sm:$0xf]  ;;  %v1828_v42 = vld [vmem:[%s4398_s10 + $0x18] sm:$0xff] }
 0x284   : > { %v3964_v45 = vmin.f32 %v1178_v44, 6.0  ;;  %3398 = vmatpush3.msra.mxu0 %v3962_v43  ;;  %3405 = vmatpush3.msra.mxu1 %v3962_v43  ;;  %v1826_v44 = vld [vmem:[%s4398_s10 + $0x8] sm:$0xff] }
 0x285   : > { %3399 = vmatprep.subr.mxu0 %v3721_v30  ;;  %3406 = vmatprep.subr.mxu1 %v3721_v30 }
 0x286   : > { %3400 = vmatpush3.msra.mxu0 %v3964_v45  ;;  %3407 = vmatpush3.msra.mxu1 %v3964_v45 }
 0x287   : > { %3402 = vmatmul.mubr.msk.f32.vlgmr.msra.gmra.mxu0 %vm1183_vm2, %v1182_v46  ;;  %3409 = vmatmul.mubr.msk.f32.vlgmr.msra.gmra.mxu1 %vm1183_vm2, %v3119_v47  ;;  %v3149_v46 = vld [vmem:[%s4398_s10 + $0x28] sm:$0xff]  ;;  %v3148_v47 = vld [vmem:[%s4398_s10 + $0x20] sm:$0xff] }
 0x288   : > { %3411 = vmatprep.subr.mxu0 %v3721_v30  ;;  %3430 = vmatprep.subr.mxu1 %v3721_v30 }
 0x289   : > { %3412 = vmatpush3.msra.mxu0 %v3128_v48  ;;  %3431 = vmatpush3.msra.mxu1 %v1264_v49 }
 0x28a   : > { %3413 = vmatprep.subr.mxu0 %v3721_v30  ;;  %3432 = vmatprep.subr.mxu1 %v3721_v30 }
 0x28b   : > { %3414 = vmatpush3.msra.mxu0 %v3127_v50  ;;  %3433 = vmatpush3.msra.mxu1 %v1263_v51 }
 0x28c   : > { %3415 = vmatprep.subr.mxu0 %v3721_v30  ;;  %3434 = vmatprep.subr.mxu1 %v3721_v30 }
 0x28d   : > { %3416 = vmatpush3.msra.mxu0 %v3126_v52  ;;  %3435 = vmatpush3.msra.mxu1 %v1262_v53  ;;  %v3154_v52 = vld [vmem:[%s4397_s9 + $0x8] sm:$0xf]  ;;  %v3159_v53 = vld [vmem:[%s4398_s10 + $0x58] sm:$0xff] }
 0x28e   : > { %3417 = vmatprep.subr.mxu0 %v3721_v30  ;;  %3436 = vmatprep.subr.mxu1 %v3721_v30 }
 0x28f   : > { %3418 = vmatpush3.msra.mxu0 %v3125_v54  ;;  %3437 = vmatpush3.msra.mxu1 %v1261_v55  ;;  %v3158_v54 = vld [vmem:[%s4398_s10 + $0x50] sm:$0xff]  ;;  %v3157_v55 = vld [vmem:[%s4398_s10 + $0x48] sm:$0xff] }
 0x290   : > { %3419 = vmatprep.subr.mxu0 %v3721_v30  ;;  %3438 = vmatprep.subr.mxu1 %v3721_v30 }
 0x291   : > { %3420 = vmatpush3.msra.mxu0 %v3124_v56  ;;  %3439 = vmatpush3.msra.mxu1 %v1260_v57  ;;  %v3156_v56 = vld [vmem:[%s4398_s10 + $0x40] sm:$0xff] }
 0x292   : > { %3421 = vmatprep.subr.mxu0 %v3721_v30  ;;  %3440 = vmatprep.subr.mxu1 %v3721_v30 }
 0x293   : > { %3422 = vmatpush3.msra.mxu0 %v3123_v58  ;;  %3441 = vmatpush3.msra.mxu1 %v1259_v59 }
 0x294   : > { %3423 = vmatprep.subr.mxu0 %v3721_v30  ;;  %3442 = vmatprep.subr.mxu1 %v3721_v30 }
 0x295   : > { %3424 = vmatpush3.msra.mxu0 %v3122_v60  ;;  %3443 = vmatpush3.msra.mxu1 %v1258_v61 }
 0x296   : > { %3425 = vmatprep.subr.mxu0 %v3721_v30  ;;  %3444 = vmatprep.subr.mxu1 %v3721_v30 }
 0x297   : > { %3426 = vmatpush3.msra.mxu0 %v3121_v62  ;;  %3427 = vmatprep.mubr.msk.f32.mxu0 %vm3722_vm1, %v3721_v30 }
 0x298   : > { %3446 = vmatprep.mubr.msk.f32.mxu1 %vm3722_vm1, %v3721_v30  ;;  %3449 = vmatprep.subr.mxu0 %v3721_v30 }
 0x299   : > { %3445 = vmatpush3.msra.mxu1 %v1257_v63 }
 0x29a   : > { %3456 = vmatprep.subr.mxu1 %v3721_v30 }
 0x347   : > { %v1253_v0 = vpop.f32.mrf.mxu0  ;;  %v1336_v1 = vpop.f32.mrf.mxu1 }
 0x348   : > { %3428 = vmatmul.mubr.msk.f32.vlgmr.msra.gmra.mxu0 %vm1349_vm3, %v1336_v1  ;;  %3447 = vmatmul.mubr.msk.f32.vlgmr.msra.gmra.mxu1 %vm1349_vm3, %v1253_v0  ;;  %v2220_v0 = vld [vmem:[%s4400_s12 + $0x8] sm:$0xff]  ;;  %v2219_v1 = vld [vmem:[%s4400_s12] sm:$0xff] }
 0x349   : > { %3450 = vmatpush3.msra.mxu0 %v3962_v43  ;;  %v3410_v3 = vpop.f32.mrf.mxu1  ;;  %3453 = vmatprep.mubr.msk.f32.mxu0 %vm3722_vm1, %v3721_v30  ;;  %v3403_v5 = vpop.f32.mrf.mxu0  ;;  %v1827_v43 = vld [vmem:[%s4398_s10 + $0x10] sm:$0xff] }
 0x34a   : > { %3451 = vmatprep.subr.mxu0 %v3721_v30  ;;  %3457 = vmatpush3.msra.mxu1 %v3140_v2  ;;  %v3161_v3 = vld [vmem:[%s4399_s11] ss:$0 sm:$0xff] }
 0x34b   : > { %3452 = vmatpush3.msra.mxu0 %v3964_v45  ;;  %3458 = vmatprep.subr.mxu1 %v3721_v30  ;;  %v1825_v45 = vld [vmem:[%s4398_s10] sm:$0xff] }
 0x34c   : > { %3454 = vmatmul.mubr.msk.f32.vlgmr.msra.gmra.mxu0 %vm1183_vm2, %v3131_v4  ;;  %3459 = vmatpush3.msra.mxu1 %v3139_v6 }
 0x34d   : > { %3460 = vmatprep.subr.mxu1 %v3721_v30  ;;  %3472 = vmatprep.mubr.msk.f32.mxu1 %vm3722_vm1, %v3721_v30 }
 0x34e   : > { %3461 = vmatpush3.msra.mxu1 %v3138_v7  ;;  %3475 = vmatprep.subr.mxu0 %v3721_v30 }
 0x34f   : > { %3462 = vmatprep.subr.mxu1 %v3721_v30  ;;  %3483 = vmatprep.mubr.msk.f32.mxu0 %vm3722_vm1, %v3721_v30 }
 0x350   : > { %3463 = vmatpush3.msra.mxu1 %v3137_v8  ;;  %3476 = vmatpush3.msra.mxu0 %v1667_v20  ;;  %v2384_v20 = vld [vmem:[%s4403_s15 + $0x10] sm:$0xff] }
 0x351   : > { %3464 = vmatprep.subr.mxu1 %v3721_v30  ;;  %3477 = vmatprep.subr.mxu0 %v3721_v30 }
 0x352   : > { %3465 = vmatpush3.msra.mxu1 %v3136_v9  ;;  %3478 = vmatpush3.msra.mxu0 %v1666_v21  ;;  %v3162_v9 = vld [vmem:[%s4401_s13] ss:$0 sm:$0xff]  ;;  %v3170_v21 = vld [vmem:[%s4403_s15 + $0x28] sm:$0xff] }
 0x353   : > { %3466 = vmatprep.subr.mxu1 %v3721_v30  ;;  %3479 = vmatprep.subr.mxu0 %v3721_v30 }
 0x354   : > { %3467 = vmatpush3.msra.mxu1 %v3135_v10  ;;  %3480 = vmatpush3.msra.mxu0 %v1665_v22  ;;  %v3169_v22 = vld [vmem:[%s4403_s15 + $0x20] sm:$0xff] }
 0x355   : > { %3468 = vmatprep.subr.mxu1 %v3721_v30  ;;  %3481 = vmatprep.subr.mxu0 %v3721_v30 }
 0x356   : > { %3469 = vmatpush3.msra.mxu1 %v3134_v11  ;;  %3482 = vmatpush3.msra.mxu0 %v1664_v23  ;;  %v2383_v23 = vld [vmem:[%s4403_s15 + $0x8] sm:$0xff] }
 0x357   : > { %3470 = vmatprep.subr.mxu1 %v3721_v30  ;;  %3486 = vmatprep.subr.mxu0 %v3721_v30 }
 0x358   : > { %3471 = vmatpush3.msra.mxu1 %v3133_v12 }
 0x359   : > { %3496 = vmatprep.subr.mxu1 %v3721_v30 }
 0x408   : > { %v1419_v13 = vpop.f32.mrf.mxu0  ;;  %v1492_v14 = vpop.f32.mrf.mxu1 }
 0x409   : > { %v1493_v15 = vadd.f32 %v1492_v14, %v1419_v13 }
 0x40a   : > { %v3429_v16 = vpop.f32.mrf.mxu0  ;;  %v3448_v17 = vpop.f32.mrf.mxu1 }
 0x40b   : > { %v2303_v16 = vld [vmem:[%s4402_s14] sm:$0x3]  ;;  %v3172_v17 = vld [vmem:[%s4403_s15 + $0x38] sm:$0xff] }
 0x40c   : > { %v1567_v18 = vpop.f32.mrf.mxu0 }
 0x40d   : > { %3473 = vmatmul.mubr.msk.f32.vlgmr.msra.gmra.mxu1 %vm1349_vm3, %v1567_v18  ;;  %v2385_v18 = vld [vmem:[%s4403_s15 + $0x18] sm:$0xff] }
 0x40e   : > { %v3455_v19 = vpop.f32.mrf.mxu0  ;;  %3504 = vmatprep.mubr.msk.f32.mxu1 %vm3722_vm1, %v3721_v30  ;;  %3497 = vmatpush3.msra.mxu1 %v3151_v32  ;;  %v3180_v32 = vld [vmem:[%s4403_s15 + $0x50] sm:$0xff] }
 0x40f   : > { %3498 = vmatprep.subr.mxu1 %v3721_v30  ;;  %v3171_v19 = vld [vmem:[%s4403_s15 + $0x30] sm:$0xff] }
 0x410   : > { %3499 = vmatpush3.msra.mxu1 %v3150_v33  ;;  %v3179_v33 = vld [vmem:[%s4403_s15 + $0x48] sm:$0xff] }
 0x411   : > { %3500 = vmatprep.subr.mxu1 %v3721_v30 }
 0x412   : > { %3501 = vmatpush3.msra.mxu1 %v3149_v46 }
 0x413   : > { %3502 = vmatprep.subr.mxu1 %v3721_v30 }
 0x414   : > { %3503 = vmatpush3.msra.mxu1 %v3148_v47 }
 0x415   : > { %3518 = vmatprep.subr.mxu1 %v3721_v30 }
 0x4cd   : > { %v1649_v24 = vpop.f32.mrf.mxu1 }
 0x4ce   : > { %v1653_v26 = vadd.f32 %v1649_v24, %v1493_v15  ;;  %v3166_v15 = vld [vmem:[%s4402_s14 + $0x2] sm:$0x3] }
 0x4cf   : > { %v3474_v27 = vpop.f32.mrf.mxu1  ;;  %v2382_v24 = vld [vmem:[%s4403_s15] sm:$0xff] }
 0x4d0   : > { %v1661_v28 = vadd.f32 %v3142_v25, %v1653_v26  ;;  %v3181_v27 = vld [vmem:[%s4403_s15 + $0x58] sm:$0xff] }
 0x4d2   : > { %v1662_v29 = vmax.f32 %v1661_v28, 0.0 }
 0x4d4   : > { %v1663_v31 = vmin.f32 %v1662_v29, 6.0  ;;  %v3175_v29 = vld [vmem:[%s4402_s14 + $0x4] sm:$0x3] }
 0x4d6   : > { %3484 = vmatmul.mubr.msk.f32.vlgmr.msra.gmra.mxu0 %vm660_vm0, %v1663_v31 }
 0x4d7   : > { %3488 = vmatprep.mubr.msk.f32.mxu0 %vm3722_vm1, %v3721_v30 }
 0x596   : > { %v1744_v35 = vpop.f32.mrf.mxu0 }
 0x597   : > { %v1745_v36 = vadd.f32 %v3143_v34, %v1744_v35  ;;  %v3178_v34 = vld [vmem:[%s4403_s15 + $0x40] sm:$0xff] }
 0x598   : > { %v3485_v37 = vpop.f32.mrf.mxu0 }
 0x599   : > { %v1748_v38 = vmax.f32 %v1745_v36, 0.0 }
 0x59b   : > { %v1749_v39 = vmin.f32 %v1748_v38, 6.0 }
 0x59d   : > { %3487 = vmatpush3.msra.mxu0 %v1749_v39 }
 0x59e   : > { %3489 = vmatmul.mubr.msk.f32.vlgmr.msra.gmra.mxu0 %vm1751_vm4, %v1750_v40  ;;  %3491 = vmatprep.subr.mxu0 %v3721_v30 }
 0x59f   : > { %3492 = vmatpush3.msra.mxu0 %v1749_v39  ;;  %3493 = vmatprep.mubr.msk.f32.mxu0 %vm3722_vm1, %v3721_v30 }
 0x5a0   : > { %3507 = vmatprep.subr.mxu0 %v3721_v30 }
 0x5a2   : > { %3494 = vmatmul.mubr.msk.f32.vlgmr.msra.gmra.mxu0 %vm1751_vm4, %v3146_v41 }
 0x5a3   : > { %3508 = vmatpush3.msra.mxu0 %v1828_v42  ;;  %3515 = vmatprep.mubr.msk.f32.mxu0 %vm3722_vm1, %v3721_v30  ;;  %v2777_v42 = vld [vmem:[%s4405_s17 + $0x8] sm:$0xff] }
 0x5a4   : > { %3509 = vmatprep.subr.mxu0 %v3721_v30 }
 0x5a5   : > { %3510 = vmatpush3.msra.mxu0 %v1827_v43  ;;  %v2776_v43 = vld [vmem:[%s4405_s17] sm:$0xff] }
 0x5a6   : > { %3511 = vmatprep.subr.mxu0 %v3721_v30 }
 0x5a7   : > { %3512 = vmatpush3.msra.mxu0 %v1826_v44 }
 0x5a8   : > { %3513 = vmatprep.subr.mxu0 %v3721_v30 }
 0x5a9   : > { %3514 = vmatpush3.msra.mxu0 %v1825_v45  ;;  %v3183_v45 = vld [vmem:[%s4404_s16] ss:$0 sm:$0xff] }
 0x5aa   : > { %3523 = vmatprep.subr.mxu0 %v3721_v30 }
 0x65e   : > { %v1821_v48 = vpop.f32.mrf.mxu0 }
 0x65f   : > { %3516 = vmatmul.mubr.msk.f32.vlgmr.msra.gmra.mxu0 %vm660_vm0, %v1821_v48 }
 0x660   : > { %v3490_v49 = vpop.f32.mrf.mxu0  ;;  %3531 = vmatprep.mubr.msk.f32.mxu0 %vm3722_vm1, %v3721_v30  ;;  %3524 = vmatpush3.msra.mxu0 %v3159_v53  ;;  %v2862_v53 = vld [vmem:[%s4407_s19 + $0x10] sm:$0xff] }
 0x661   : > { %3525 = vmatprep.subr.mxu0 %v3721_v30 }
 0x662   : > { %v1900_v50 = vpop.f32.mrf.mxu0  ;;  %3526 = vmatpush3.msra.mxu0 %v3158_v54  ;;  %v3188_v54 = vld [vmem:[%s4407_s19 + $0x30] sm:$0xff] }
 0x663   : > { %3505 = vmatmul.mubr.msk.f32.vlgmr.msra.gmra.mxu1 %vm660_vm0, %v1900_v50  ;;  %3527 = vmatprep.subr.mxu0 %v3721_v30 }
 0x664   : > { %3519 = vmatpush3.msra.mxu1 %v1749_v39  ;;  %v3495_v51 = vpop.f32.mrf.mxu0  ;;  %3520 = vmatprep.mubr.msk.f32.mxu1 %vm3722_vm1, %v3721_v30 }
 0x665   : > { %3534 = vmatprep.subr.mxu1 %v3721_v30  ;;  %3528 = vmatpush3.msra.mxu0 %v3157_v55  ;;  %v2863_v51 = vld [vmem:[%s4407_s19 + $0x18] sm:$0xff]  ;;  %v2861_v55 = vld [vmem:[%s4407_s19 + $0x8] sm:$0xff] }
 0x666   : > { %3529 = vmatprep.subr.mxu0 %v3721_v30 }
 0x667   : > { %3521 = vmatmul.mubr.msk.f32.vlgmr.msra.gmra.mxu1 %vm1751_vm4, %v3154_v52  ;;  %3530 = vmatpush3.msra.mxu0 %v3156_v56  ;;  %v3189_v52 = vld [vmem:[%s4407_s19 + $0x38] sm:$0xff]  ;;  %v3187_v56 = vld [vmem:[%s4407_s19 + $0x28] sm:$0xff] }
 0x668   : > { %3538 = vmatprep.mubr.msk.f32.mxu1 %vm3722_vm1, %v3721_v30  ;;  %3546 = vmatprep.subr.mxu0 %v3721_v30 }
 0x669   : > { %3535 = vmatpush3.msra.mxu1 %v2220_v0 }
 0x66a   : > { %3536 = vmatprep.subr.mxu1 %v3721_v30 }
 0x66b   : > { %3537 = vmatpush3.msra.mxu1 %v2219_v1 }
 0x66c   : > { %3541 = vmatprep.subr.mxu1 %v3721_v30 }
 0x71f   : > { %v2051_v57 = vpop.f32.mrf.mxu0 }
 0x721   : > { %v3517_v58 = vpop.f32.mrf.mxu0 }
 0x722   : > { %v3186_v58 = vld [vmem:[%s4407_s19 + $0x20] sm:$0xff] }
 0x723   : > { %v1978_v59 = vpop.f32.mrf.mxu1 }
 0x724   : > { %v2052_v60 = vadd.f32 %v2051_v57, %v1978_v59  ;;  %v2860_v57 = vld [vmem:[%s4407_s19] sm:$0xff] }
 0x725   : > { %v3506_v61 = vpop.f32.mrf.mxu1  ;;  %v3184_v59 = vld [vmem:[%s4406_s18] ss:$0 sm:$0xff] }
 0x727   : > { %v2126_v62 = vpop.f32.mrf.mxu1 }
 0x728   : > { %3532 = vmatmul.mubr.msk.f32.vlgmr.msra.gmra.mxu0 %vm660_vm0, %v2126_v62 }
 0x729   : > { %v3522_v63 = vpop.f32.mrf.mxu1  ;;  %3548 = vmatprep.mubr.msk.f32.mxu0 %vm3722_vm1, %v3721_v30 }
 0x7e8   : > { %v2204_v2 = vpop.f32.mrf.mxu0 }
 0x7e9   : > { %v2208_v4 = vadd.f32 %v2204_v2, %v2052_v60 }
 0x7ea   : > { %v3533_v5 = vpop.f32.mrf.mxu0 }
 0x7eb   : > { %v2216_v6 = vadd.f32 %v3161_v3, %v2208_v4 }
 0x7ed   : > { %v2217_v7 = vmax.f32 %v2216_v6, 0.0 }
 0x7ef   : > { %v2218_v8 = vmin.f32 %v2217_v7, 6.0 }
 0x7f1   : > { %3539 = vmatmul.mubr.msk.f32.vlgmr.msra.gmra.mxu1 %vm1183_vm2, %v2218_v8 }
 0x7f2   : > { %3543 = vmatprep.mubr.msk.f32.mxu1 %vm3722_vm1, %v3721_v30 }
 0x8b1   : > { %v2297_v10 = vpop.f32.mrf.mxu1 }
 0x8b2   : > { %v2298_v11 = vadd.f32 %v3162_v9, %v2297_v10 }
 0x8b3   : > { %v3540_v12 = vpop.f32.mrf.mxu1 }
 0x8b4   : > { %v2301_v13 = vmax.f32 %v2298_v11, 0.0 }
 0x8b6   : > { %v2302_v14 = vmin.f32 %v2301_v13, 6.0 }
 0x8b8   : > { %3542 = vmatpush3.msk.msra.mxu1 %vm2308_vm5, %v2302_v14  ;;  %3547 = vmatpush3.msk.msra.mxu0 %vm2308_vm5, %v2302_v14 }
 0x8b9   : > { %3549 = vmatmul.mubr.msk.f32.vlgmr.msra.gmra.mxu0 %vm2304_vm6, %v3166_v15  ;;  %3544 = vmatmul.mubr.msk.f32.vlgmr.msra.gmra.mxu1 %vm2304_vm6, %v2303_v16 }
 0x8ba   : > { %3551 = vmatprep.subr.mxu1 %v3721_v30  ;;  %3562 = vmatprep.subr.mxu0 %v3721_v30 }
 0x8bb   : > { %3552 = vmatpush3.msra.mxu1 %v3172_v17  ;;  %3563 = vmatpush3.msra.mxu0 %v2385_v18 }
 0x8bc   : > { %3553 = vmatprep.subr.mxu1 %v3721_v30  ;;  %3564 = vmatprep.subr.mxu0 %v3721_v30 }
 0x8bd   : > { %3554 = vmatpush3.msra.mxu1 %v3171_v19  ;;  %3565 = vmatpush3.msra.mxu0 %v2384_v20 }
 0x8be   : > { %3555 = vmatprep.subr.mxu1 %v3721_v30  ;;  %3559 = vmatprep.mubr.msk.f32.mxu1 %vm3722_vm1, %v3721_v30 }
 0x8bf   : > { %3556 = vmatpush3.msra.mxu1 %v3170_v21  ;;  %3566 = vmatprep.subr.mxu0 %v3721_v30 }
 0x8c0   : > { %3557 = vmatprep.subr.mxu1 %v3721_v30  ;;  %3570 = vmatprep.mubr.msk.f32.mxu0 %vm3722_vm1, %v3721_v30 }
 0x8c1   : > { %3558 = vmatpush3.msra.mxu1 %v3169_v22  ;;  %3567 = vmatpush3.msra.mxu0 %v2383_v23 }
 0x8c2   : > { %3573 = vmatprep.subr.mxu1 %v3721_v30  ;;  %3568 = vmatprep.subr.mxu0 %v3721_v30 }
 0x8c3   : > { %3569 = vmatpush3.msra.mxu0 %v2382_v24 }
 0x8c4   : > { %3578 = vmatprep.subr.mxu0 %v3721_v30 }
 0x979   : > { %v2457_v25 = vpop.f32.mrf.mxu0  ;;  %v2378_v26 = vpop.f32.mrf.mxu1 }
 0x97a   : > { %3560 = vmatmul.mubr.msk.f32.vlgmr.msra.gmra.mxu1 %vm660_vm0, %v2457_v25  ;;  %3571 = vmatmul.mubr.msk.f32.vlgmr.msra.gmra.mxu0 %vm660_vm0, %v2378_v26 }
 0x97b   : > { %3574 = vmatpush3.msk.msra.mxu1 %vm2308_vm5, %v2302_v14  ;;  %v3550_v28 = vpop.f32.mrf.mxu0  ;;  %3575 = vmatprep.mubr.msk.f32.mxu1 %vm3722_vm1, %v3721_v30  ;;  %v3545_v31 = vpop.f32.mrf.mxu1 }
 0x97c   : > { %3579 = vmatpush3.msra.mxu0 %v3181_v27  ;;  %3586 = vmatprep.mubr.msk.f32.mxu0 %vm3722_vm1, %v3721_v30 }
 0x97d   : > { %3580 = vmatprep.subr.mxu0 %v3721_v30  ;;  %3589 = vmatprep.subr.mxu1 %v3721_v30 }
 0x97e   : > { %3576 = vmatmul.mubr.msk.f32.vlgmr.msra.gmra.mxu1 %vm2304_vm6, %v3175_v29  ;;  %3581 = vmatpush3.msra.mxu0 %v3180_v32 }
 0x97f   : > { %3593 = vmatprep.mubr.msk.f32.mxu1 %vm3722_vm1, %v3721_v30  ;;  %3582 = vmatprep.subr.mxu0 %v3721_v30 }
 0x980   : > { %3583 = vmatpush3.msra.mxu0 %v3179_v33  ;;  %3590 = vmatpush3.msra.mxu1 %v2777_v42 }
 0x981   : > { %3584 = vmatprep.subr.mxu0 %v3721_v30  ;;  %3591 = vmatprep.subr.mxu1 %v3721_v30 }
 0x982   : > { %3585 = vmatpush3.msra.mxu0 %v3178_v34  ;;  %3592 = vmatpush3.msra.mxu1 %v2776_v43 }
 0x983   : > { %3607 = vmatprep.subr.mxu0 %v3721_v30  ;;  %3596 = vmatprep.subr.mxu1 %v3721_v30 }
 0xa3a   : > { %v2535_v35 = vpop.f32.mrf.mxu1  ;;  %v2608_v36 = vpop.f32.mrf.mxu0 }
 0xa3b   : > { %v2609_v37 = vadd.f32 %v2608_v36, %v2535_v35 }
 0xa3c   : > { %v3561_v38 = vpop.f32.mrf.mxu1  ;;  %v3572_v39 = vpop.f32.mrf.mxu0 }
 0xa3e   : > { %v2683_v40 = vpop.f32.mrf.mxu1 }
 0xa3f   : > { %3587 = vmatmul.mubr.msk.f32.vlgmr.msra.gmra.mxu0 %vm660_vm0, %v2683_v40 }
 0xa40   : > { %v3577_v41 = vpop.f32.mrf.mxu1  ;;  %3615 = vmatprep.mubr.msk.f32.mxu0 %vm3722_vm1, %v3721_v30  ;;  %3608 = vmatpush3.msra.mxu0 %v2863_v51 }
 0xa41   : > { %3609 = vmatprep.subr.mxu0 %v3721_v30 }
 0xa42   : > { %3610 = vmatpush3.msra.mxu0 %v2862_v53 }
 0xa43   : > { %3611 = vmatprep.subr.mxu0 %v3721_v30 }
 0xa44   : > { %3612 = vmatpush3.msra.mxu0 %v2861_v55 }
 0xa45   : > { %3613 = vmatprep.subr.mxu0 %v3721_v30 }
 0xa46   : > { %3614 = vmatpush3.msra.mxu0 %v2860_v57 }
 0xaff   : > { %v2761_v44 = vpop.f32.mrf.mxu0 }
 0xb00   : > { %v2765_v46 = vadd.f32 %v2761_v44, %v2609_v37 }
 0xb01   : > { %v3588_v47 = vpop.f32.mrf.mxu0 }
 0xb02   : > { %v2773_v48 = vadd.f32 %v3183_v45, %v2765_v46 }
 0xb04   : > { %v2774_v49 = vmax.f32 %v2773_v48, 0.0 }
 0xb06   : > { %v2775_v50 = vmin.f32 %v2774_v49, 6.0 }
 0xb08   : > { %3594 = vmatmul.mubr.msk.f32.vlgmr.msra.gmra.mxu1 %vm1183_vm2, %v2775_v50 }
 0xb09   : > { %3604 = vmatprep.mubr.msk.f32.mxu1 %vm3722_vm1, %v3721_v30  ;;  %3597 = vmatpush3.msra.mxu1 %v3189_v52 }
 0xb0a   : > { %3598 = vmatprep.subr.mxu1 %v3721_v30 }
 0xb0b   : > { %3599 = vmatpush3.msra.mxu1 %v3188_v54 }
 0xb0c   : > { %3600 = vmatprep.subr.mxu1 %v3721_v30 }
 0xb0d   : > { %3601 = vmatpush3.msra.mxu1 %v3187_v56 }
 0xb0e   : > { %3602 = vmatprep.subr.mxu1 %v3721_v30  ;;  %v3015_v30 = vld [vmem:[%s4408_s20] sm:$0x1] }
 0xb0f   : > { %3603 = vmatpush3.msra.mxu1 %v3186_v58 }
 0xbc8   : > { %v2854_v60 = vpop.f32.mrf.mxu1 }
 0xbc9   : > { %v2855_v61 = vadd.f32 %v3184_v59, %v2854_v60 }
 0xbca   : > { %v3595_v62 = vpop.f32.mrf.mxu1 }
 0xbcb   : > { %v2858_v63 = vmax.f32 %v2855_v61, 0.0 }
 0xbcd   : > { %v2859_v0 = vmin.f32 %v2858_v63, 6.0 }
 0xbcf   : > { %v2870_v1 = vrot.slane %v2859_v0, 1  ;;  %3616 = vmatmul.mubr.msk.f32.vlgmr.msra.gmra.mxu0 %vm660_vm0, %v2859_v0 }
 0xbd1   : > { %3605 = vmatmul.mubr.msk.f32.vlgmr.msra.gmra.mxu1 %vm660_vm0, %v2870_v1 }
 0xc8f   : > { %v3011_v2 = vpop.f32.mrf.mxu0 }
 0xc91   : > { %v2939_v3 = vpop.f32.mrf.mxu1  ;;  %v3617_v4 = vpop.f32.mrf.mxu0 }
 0xc92   : > { %v3012_v5 = vadd.f32 %v3011_v2, %v2939_v3 }
 0xc93   : > { %v3606_v6 = vpop.f32.mrf.mxu1 }
 0xc94   : > { %v3016_v7 = vadd.f32 %v3015_v30, %v3012_v5 }
 0xc96   : > { %3018 = vst.msk [vmem:[%s648_s26] sm:$0x1] %vm3017_vm7, %v3016_v7 }
 0xc97   : > { %3672 = shalt.err (!%p3669_p3)
}
 0xc98   : > { %s3673_s7 = scalar_lea.hbm %s3030_s0, 16  ;;  %s3677_s26 = scalar_lea.hbm %s4409_s21, 32 }
 0xc99   : > { %p3674_p4 = scmp.ne.s32.totalorder %s3030_s0, %s3673_s7  ;;  %p3678_p9 = scmp.lt.s32.totalorder %s3030_s0, %s4409_s21 }
 0xc9a   : > { %p3679_p10 = scmp.lt.s32.totalorder %s3677_s26, %s3673_s7 }
 0xc9b   : > { %p3675_p7 = pnand %p3674_p4, %p3872_p5 }
 0xc9c   : > { %p3680_p11 = por %p3679_p10, %p3678_p9 }
 0xc9d   : > { %p3676_p8 = pneg %p3675_p7 }
 0xc9f   : > { %p3681_p12 = pnand %p3680_p11, %p3676_p8 }
 0xca1   : > { %3684 = shalt.err (!%p3681_p12)
}
 0xca2   : > { %3618 = dma.vmem_to_hbm [thread:$0]  (%p3872_p5), %s3033_s29, 16, %s3030_s0, %s3020_s1  }
 0xca3 PF: > { %s4445_s6 = sld [smem:[#allocation5_spill]]  ;;  %p3624_p13 = scmp.ge.s32.totalorder %s3719_s27, 2 }
 0xca5   : > { %p3621_p0 = pnand %p3624_p13, %p3876_p6 }
 0xca7   : > { %p3622_p1 = pneg %p3621_p0 }
 0xca9   : > { %s3044_s3 = sand.u32 1, %s4445_s6  }
 0xcaa   : > { %s3045_s24 = scalar_lea.sflag [#allocation3], %s3044_s3 }
 0xcab   : > { %3702 = dma.done.wait (%p3622_p1), %s3045_s24, 16  }
 0xcac   : > { %3704 = vsyncadd (%p3622_p1), %s3045_s24, 4294967280  ;;  %s4447_s27 = sld [smem:[#allocation7_spill]]  ;;  %s4450_s2 = smov %s3711_s25 }
 0xcad   : > { %s4448_s7 = sld [smem:[#allocation6_spill]] }
 0xcae   : > { %s4449_s26 = sld [smem:[#allocation8_spill]] }
 0xcb2   : > { %p31_p2 = scmp.ge.s32.totalorder %s4447_s27, 4  }
 0xcb3   : > { %s4451_s25 = smov %s4448_s7 }
 0xcb4   :  { %33 = sbr.rel (!%p31_p2) target bundleno = 12 (0xc), region = 156 }
 0xcb9   :  { %3049 = vsyncpa [#allocation3], 1 }
 0xcba   :  { %3051 = vsyncpa [#allocation3 + $0x1], 1 }

</bundles_post_ra>
